<compile_context>
chip_gen: v7x
topology: tpu7x:2x2x1
jax: 0.10.0
libtpu: 0.0.40
codegen_flags: <defaults>
</compile_context>

<pallas_src>
import functools

import jax
import jax.numpy as jnp
from jax import lax
from jax.experimental import pallas as pl
from jax.experimental.pallas import tpu as pltpu


# --------------------------------------------------------------------------
# Kernels
# --------------------------------------------------------------------------
def _qkv_proj_kernel(x_ref, wqkv_ref, bqkv_ref, q_ref, kv_ref):
    """x_ref: (1, TQ, C); wqkv_ref: (3D, C) torch layout (Q rows pre-scaled);
    bqkv_ref: (1, 3D); outputs q_ref: (1, TQ, D), kv_ref: (1, TQ, 2D)."""
    x = x_ref[0]                                                # (TQ, C)
    # F.linear: contract last dims of both operands — no weight transpose.
    qkv = lax.dot_general(x, wqkv_ref[...], (((1,), (1,)), ((), ())),
                          preferred_element_type=jnp.float32)   # (TQ, 3D)
    qkv = qkv + bqkv_ref[...]                                   # fused qkv bias
    d = q_ref.shape[-1]
    q_ref[0] = qkv[:, :d].astype(q_ref.dtype)                   # pre-scaled Q
    kv_ref[0] = qkv[:, d:].astype(kv_ref.dtype)                 # fused K|V


def _attn_core_kernel(q_ref, kv_ref, wproj_ref, bproj_ref, o_ref, *, num_heads):
    """q_ref: (1, TQ, D) pre-scaled Q tile; kv_ref: (1, N, 2D) full K|V;
    wproj_ref: (C, D) torch layout; bproj_ref: (1, C); o_ref: (1, TQ, C)."""
    d = q_ref.shape[-1]
    hd = d // num_heads
    q = q_ref[0]                                                # (TQ, D)
    kv = kv_ref[0]                                              # (N, 2D)
    k = kv[:, :d]
    v = kv[:, d:]

    head_outs = []
    # Static per-head loop over 2-D (rows, hd) slabs: the score matmul output
    # (TQ, N) is lane-dense and there is no (N, H, hd) relayout through XLU.
    # TODO(synk): pack 2-4 heads per MXU call (stack along the lane axis) when
    # hd < 256 to better fill the 256-wide MXU on v6e/v7x.
    for h in range(num_heads):
        sl = slice(h * hd, (h + 1) * hd)
        q_h = q[:, sl]                                          # (TQ, hd), * scale already folded
        k_h = k[:, sl]                                          # (N, hd)
        v_h = v[:, sl]                                          # (N, hd)
        # scores: contract on hd (last dim of both), f32 accumulation.
        s = lax.dot_general(q_h, k_h, (((1,), (1,)), ((), ())),
                            preferred_element_type=jnp.float32)  # (TQ, N)
        # softmax math in f32 (v5e-safe); the divide is replaced by an EUP
        # approximate reciprocal applied to the small (TQ, hd) PV result.
        m = jnp.max(s, axis=-1, keepdims=True)
        p = jnp.exp(s - m)
        denom = jnp.sum(p, axis=-1, keepdims=True)
        # PV matmul: cast probs to the MXU operand dtype (bf16 when inputs are
        # bf16), keep f32 accumulation.
        o_h = jnp.dot(p.astype(v_h.dtype), v_h,
                      preferred_element_type=jnp.float32)        # (TQ, hd)
        head_outs.append(o_h * pl.reciprocal(denom, approx=True))
    out = jnp.concatenate(head_outs, axis=-1)                    # (TQ, D), f32

    # output projection (torch layout (C, D): contract on D) + bias.
    y = lax.dot_general(out.astype(wproj_ref.dtype), wproj_ref[...],
                        (((1,), (1,)), ((), ())),
                        preferred_element_type=jnp.float32)      # (TQ, C)
    y = y + bproj_ref[...]
    o_ref[0] = y.astype(o_ref.dtype)
    # TODO(synk): for long sequences (N >~ 512, esp. v7x's 64 MiB VMEM) replace
    # the full-N KV block with an online-softmax (flash) loop over KV tiles.


# --------------------------------------------------------------------------
# Parameter prep (one-time, at init — NOT per forward)
# --------------------------------------------------------------------------
def prepare_attention_params(wqkv, q_bias, v_bias, wproj, bproj, *,
                             num_heads, qk_scale=None, dtype=None):
    """Fold the softmax scale into the Q rows of wqkv (and q_bias), build the
    fused [q_bias, 0, v_bias] qkv bias of the PyTorch module, keep torch
    (out, in) weight layout, and optionally cast to `dtype` (e.g. bf16) so MXU
    operands run at full rate.  Do this once at param-init time."""
    wqkv = jnp.asarray(wqkv)
    wproj = jnp.asarray(wproj)
    bproj = jnp.asarray(bproj)
    d3, c = wqkv.shape
    d = d3 // 3
    hd = d // num_heads
    scale = qk_scale if qk_scale is not None else hd ** (-0.5)

    row_scale = jnp.concatenate([jnp.full((d,), scale, wqkv.dtype),
                                 jnp.ones((2 * d,), wqkv.dtype)])
    wqkv = wqkv * row_scale[:, None]

    if q_bias is None:
        bqkv = jnp.zeros((d3,), wqkv.dtype)
    else:
        bqkv = jnp.concatenate([jnp.asarray(q_bias) * scale,
                                jnp.zeros((d,), wqkv.dtype),
                                jnp.asarray(v_bias)])

    params = dict(wqkv=wqkv, bqkv=bqkv.reshape(1, d3),
                  wproj=wproj, bproj=bproj.reshape(1, -1))
    if dtype is not None:
        params = {k: v.astype(dtype) for k, v in params.items()}
    return params


# --------------------------------------------------------------------------
# Forward wrapper
# --------------------------------------------------------------------------
def _pick_q_tile(n):
    for t in (256, 128, 64, 32, 16, 8):
        if n % t == 0:
            return t
    return n


def _attention_forward(x, params, *, num_heads, q_tile, pin_weights,
                       vmem_limit_bytes):
    wqkv, bqkv = params["wqkv"], params["bqkv"]
    wproj, bproj = params["wproj"], params["bproj"]
    b, n, c = x.shape
    d3 = wqkv.shape[0]
    d = d3 // 3
    d2 = 2 * d
    assert d % num_heads == 0, "all_head_dim must be divisible by num_heads"
    assert wqkv.shape[1] == c and wproj.shape == (c, d)
    assert wqkv.dtype == x.dtype, \
        "cast params with prepare_attention_params(..., dtype=x.dtype)"

    tq = q_tile if q_tile is not None else _pick_q_tile(n)
    assert n % tq == 0, "q_tile must divide N"
    grid = (b, n // tq)

    cparams = pltpu.CompilerParams(
        dimension_semantics=("parallel", "parallel"),
        vmem_limit_bytes=vmem_limit_bytes)

    def const_spec(shape):
        nd = len(shape)
        if pin_weights:
            # Constant block index -> a second pipeline buffer is pure waste.
            return pl.BlockSpec(shape, lambda *_: (0,) * nd,
                                pipeline_mode=pl.Buffered(1))
        return pl.BlockSpec(shape, lambda *_: (0,) * nd)

    # ---- kernel 1: fused qkv projection (scale / bias already folded in) ----
    q, kv = pl.pallas_call(
        _qkv_proj_kernel,
        out_shape=(jax.ShapeDtypeStruct((b, n, d), x.dtype),
                   jax.ShapeDtypeStruct((b, n, d2), x.dtype)),
        grid=grid,
        in_specs=[
            pl.BlockSpec((1, tq, c), lambda bi, qi: (bi, qi, 0)),
            const_spec((d3, c)),
            const_spec((1, d3)),
        ],
        out_specs=(
            pl.BlockSpec((1, tq, d), lambda bi, qi: (bi, qi, 0)),
            pl.BlockSpec((1, tq, d2), lambda bi, qi: (bi, qi, 0)),
        ),
        compiler_params=cparams,
    )(x, wqkv, bqkv)

    # ---- kernel 2: q-tiled attention core + output projection ----
    kernel = functools.partial(_attn_core_kernel, num_heads=num_heads)
    out = pl.pallas_call(
        kernel,
        out_shape=jax.ShapeDtypeStruct((b, n, c), x.dtype),
        grid=grid,
        in_specs=[
            pl.BlockSpec((1, tq, d), lambda bi, qi: (bi, qi, 0)),
            pl.BlockSpec((1, n, d2), lambda bi, qi: (bi, 0, 0)),   # full K|V
            const_spec((c, d)),
            const_spec((1, c)),
        ],
        # Lane-dense output store: keep C a multiple of 128 (pad / fold N*C
        # for odd embed dims such as 200) so stores are unmasked vst.
        out_specs=pl.BlockSpec((1, tq, c), lambda bi, qi: (bi, qi, 0)),
        compiler_params=cparams,
    )(q, kv, wproj, bproj)

    # Sync here so any Buffered(1)-related lowering/runtime issue is caught by
    # the fallback in attention_forward (test harness only).
    return jax.block_until_ready(out)


def attention_forward(x, params, *, num_heads, q_tile=None, pin_weights=True,
                      vmem_limit_bytes=48 * 1024 * 1024):
    """x: (B, N, C); params from prepare_attention_params (torch layouts)."""
    try:
        return _attention_forward(x, params, num_heads=num_heads,
                                  q_tile=q_tile, pin_weights=pin_weights,
                                  vmem_limit_bytes=vmem_limit_bytes)
    except Exception:
        if not pin_weights:
            raise
        # pl.Buffered(1) weight pinning not supported on this jax/libtpu build;
        # retry with default double-buffering (correctness unaffected).
        return _attention_forward(x, params, num_heads=num_heads,
                                  q_tile=q_tile, pin_weights=False,
                                  vmem_limit_bytes=vmem_limit_bytes)


# --------------------------------------------------------------------------
# Pure-JAX reference (mirrors the PyTorch Attention.forward)
# --------------------------------------------------------------------------
def attention_reference(x, wqkv, q_bias, v_bias, wproj, bproj, *, num_heads):
    B, N, C = x.shape
    D = wproj.shape[1]
    hd = D // num_heads
    scale = hd ** (-0.5)
    qkv = jnp.einsum('bnc,oc->bno', x, wqkv)                     # F.linear
    if q_bias is not None:
        qkv = qkv + jnp.concatenate([q_bias, jnp.zeros_like(v_bias), v_bias])
    qkv = qkv.reshape(B, N, 3, num_heads, hd).transpose(2, 0, 3, 1, 4)
    q, k, v = qkv[0], qkv[1], qkv[2]                             # (B, H, N, hd)
    attn = (q * scale) @ jnp.swapaxes(k, -2, -1)                 # (B, H, N, N)
    attn = jax.nn.softmax(attn, axis=-1)
    out = (attn @ v).transpose(0, 2, 1, 3).reshape(B, N, D)
    return jnp.einsum('bnd,cd->bnc', out, wproj) + bproj


# --------------------------------------------------------------------------
if __name__ == "__main__":
    # Small config consistent with the module: dim=C, head_dim=C/num_heads,
    # all_head_dim=C (attn_head_dim=None), qkv_bias=True as in the full model.
    B, N, C = 2, 128, 128
    num_heads = 8
    all_head_dim = C

    key = jax.random.PRNGKey(0)
    kx, kw, kqb, kvb, kp, kb = jax.random.split(key, 6)
    x = jax.random.normal(kx, (B, N, C), dtype=jnp.float32)
    wqkv = 0.02 * jax.random.normal(kw, (3 * all_head_dim, C), dtype=jnp.float32)
    q_bias = 0.02 * jax.random.normal(kqb, (all_head_dim,), dtype=jnp.float32)
    v_bias = 0.02 * jax.random.normal(kvb, (all_head_dim,), dtype=jnp.float32)
    wproj = 0.02 * jax.random.normal(kp, (C, all_head_dim), dtype=jnp.float32)
    bproj = 0.02 * jax.random.normal(kb, (C,), dtype=jnp.float32)

    # ---- f32 run (only the EUP approximate reciprocal differs from ref) ----
    params = prepare_attention_params(wqkv, q_bias, v_bias, wproj, bproj,
                                      num_heads=num_heads)
    y = attention_forward(x, params, num_heads=num_heads, q_tile=64)
    y = jax.block_until_ready(y)
    y_ref = attention_reference(x, wqkv, q_bias, v_bias, wproj, bproj,
                                num_heads=num_heads)
    assert y.shape == (B, N, C)
    assert jnp.allclose(y, y_ref, rtol=1e-2, atol=1e-3), "f32 mismatch vs ref"

    # ---- bf16 run: MXU operands at bf16 rate, f32 accumulate / softmax ----
    x16 = x.astype(jnp.bfloat16)
    params16 = prepare_attention_params(wqkv, q_bias, v_bias, wproj, bproj,
                                        num_heads=num_heads, dtype=jnp.bfloat16)
    y16 = attention_forward(x16, params16, num_heads=num_heads, q_tile=64)
    y16 = jax.block_until_ready(y16)
    r32 = lambda a: a.astype(jnp.bfloat16).astype(jnp.float32)
    y16_ref = attention_reference(r32(x), r32(wqkv), r32(q_bias), r32(v_bias),
                                  r32(wproj), r32(bproj), num_heads=num_heads)
    assert jnp.allclose(y16.astype(jnp.float32), y16_ref,
                        rtol=5e-2, atol=5e-2), "bf16 mismatch vs ref"

    print("KERNEL_OK")
</pallas_src>

<mosaic_0001>
module attributes {stable_mosaic.version = 11 : i64} {
  func.func @_qkv_proj_kernel(%arg0: i32, %arg1: i32, %arg2: memref<1x64x128xf32, #tpu.memory_space<vmem>>, %arg3: memref<384x128xf32, #tpu.memory_space<vmem>>, %arg4: memref<1x384xf32, #tpu.memory_space<vmem>>, %arg5: memref<1x64x128xf32, #tpu.memory_space<vmem>>, %arg6: memref<1x64x256xf32, #tpu.memory_space<vmem>>) attributes {dimension_semantics = [#tpu.dimension_semantics<parallel>, #tpu.dimension_semantics<parallel>], iteration_bounds = array<i64: 2, 2>, scalar_prefetch = 0 : i64, scratch_operands = 0 : i64, tpu.core_type = #tpu.core_type<tc>, window_params = [{transform_indices = @transform_0, window_bounds = array<i64: 1, 64, 128>}, {pipeline_mode = #tpu.pipeline_mode<synchronous>, transform_indices = @transform_1, window_bounds = array<i64: 384, 128>}, {pipeline_mode = #tpu.pipeline_mode<synchronous>, transform_indices = @transform_2, window_bounds = array<i64: 1, 384>}, {transform_indices = @transform_3, window_bounds = array<i64: 1, 64, 128>}, {transform_indices = @transform_4, window_bounds = array<i64: 1, 64, 256>}]} {
    %c0 = arith.constant 0 : index
    %c0_0 = arith.constant 0 : index
    %c0_1 = arith.constant 0 : index
    %0 = vector.load %arg2[%c0, %c0_0, %c0_1] : memref<1x64x128xf32, #tpu.memory_space<vmem>>, vector<1x64x128xf32>
    %1 = vector.shape_cast %0 : vector<1x64x128xf32> to vector<64x128xf32>
    %c0_2 = arith.constant 0 : index
    %c0_3 = arith.constant 0 : index
    %2 = vector.load %arg3[%c0_2, %c0_3] : memref<384x128xf32, #tpu.memory_space<vmem>>, vector<384x128xf32>
    %cst = arith.constant dense<0.000000e+00> : vector<64x384xf32>
    %3 = tpu.matmul %1, %2, %cst {dimension_numbers = #tpu.dot_dimension_numbers<[1], [1], [0], [0], [0, 0, 1, 0], [], []>} : vector<64x128xf32>, vector<384x128xf32>, vector<64x384xf32> -> vector<64x384xf32>
    %c0_4 = arith.constant 0 : index
    %c0_5 = arith.constant 0 : index
    %4 = vector.load %arg4[%c0_4, %c0_5] : memref<1x384xf32, #tpu.memory_space<vmem>>, vector<1x384xf32>
    %5 = vector.broadcast %4 : vector<1x384xf32> to vector<64x384xf32>
    %6 = arith.addf %3, %5 : vector<64x384xf32>
    %7 = vector.extract_strided_slice %6 {offsets = [0, 0], sizes = [64, 128], strides = [1, 1]} : vector<64x384xf32> to vector<64x128xf32>
    %c0_6 = arith.constant 0 : index
    %c0_7 = arith.constant 0 : index
    %c0_8 = arith.constant 0 : index
    %8 = vector.load %arg5[%c0_6, %c0_7, %c0_8] : memref<1x64x128xf32, #tpu.memory_space<vmem>>, vector<1x64x128xf32>
    %9 = vector.shape_cast %8 : vector<1x64x128xf32> to vector<64x128xf32>
    %10 = vector.shape_cast %7 : vector<64x128xf32> to vector<1x64x128xf32>
    tpu.vector_store %arg5[%c0_6, %c0_7, %c0_8], %10 {strides = array<i32>} : memref<1x64x128xf32, #tpu.memory_space<vmem>>, vector<1x64x128xf32>,
    %11 = vector.extract_strided_slice %6 {offsets = [0, 128], sizes = [64, 256], strides = [1, 1]} : vector<64x384xf32> to vector<64x256xf32>
    %c0_9 = arith.constant 0 : index
    %c0_10 = arith.constant 0 : index
    %c0_11 = arith.constant 0 : index
    %12 = vector.load %arg6[%c0_9, %c0_10, %c0_11] : memref<1x64x256xf32, #tpu.memory_space<vmem>>, vector<1x64x256xf32>
    %13 = vector.shape_cast %12 : vector<1x64x256xf32> to vector<64x256xf32>
    %14 = vector.shape_cast %11 : vector<64x256xf32> to vector<1x64x256xf32>
    tpu.vector_store %arg6[%c0_9, %c0_10, %c0_11], %14 {strides = array<i32>} : memref<1x64x256xf32, #tpu.memory_space<vmem>>, vector<1x64x256xf32>,
    return
  }
  func.func @transform_0(%arg0: i32, %arg1: i32) -> (i32, i32, i32) {
    %c0_i32 = arith.constant 0 : i32
    %c0_i32_0 = arith.constant 0 : i32
    return %arg0, %arg1, %c0_i32 : i32, i32, i32
  }
  func.func @transform_1(%arg0: i32, %arg1: i32) -> (i32, i32) {
    %c0_i32 = arith.constant 0 : i32
    %c0_i32_0 = arith.constant 0 : i32
    %c0_i32_1 = arith.constant 0 : i32
    return %c0_i32, %c0_i32_0 : i32, i32
  }
  func.func @transform_2(%arg0: i32, %arg1: i32) -> (i32, i32) {
    %c0_i32 = arith.constant 0 : i32
    %c0_i32_0 = arith.constant 0 : i32
    %c0_i32_1 = arith.constant 0 : i32
    return %c0_i32, %c0_i32_0 : i32, i32
  }
  func.func @transform_3(%arg0: i32, %arg1: i32) -> (i32, i32, i32) {
    %c0_i32 = arith.constant 0 : i32
    %c0_i32_0 = arith.constant 0 : i32
    return %arg0, %arg1, %c0_i32 : i32, i32, i32
  }
  func.func @transform_4(%arg0: i32, %arg1: i32) -> (i32, i32, i32) {
    %c0_i32 = arith.constant 0 : i32
    %c0_i32_0 = arith.constant 0 : i32
    return %arg0, %arg1, %c0_i32 : i32, i32, i32
  }
}

module attributes {stable_mosaic.version = 11 : i64} {
  func.func @_qkv_proj_kernel(%arg0: i32, %arg1: i32, %arg2: memref<1x64x128xf32, #tpu.memory_space<vmem>>, %arg3: memref<384x128xf32, #tpu.memory_space<vmem>>, %arg4: memref<1x384xf32, #tpu.memory_space<vmem>>, %arg5: memref<1x64x128xf32, #tpu.memory_space<vmem>>, %arg6: memref<1x64x256xf32, #tpu.memory_space<vmem>>) attributes {dimension_semantics = [#tpu.dimension_semantics<parallel>, #tpu.dimension_semantics<parallel>], iteration_bounds = array<i64: 2, 2>, scalar_prefetch = 0 : i64, scratch_operands = 0 : i64, tpu.core_type = #tpu.core_type<tc>, window_params = [{transform_indices = @transform_0, window_bounds = array<i64: 1, 64, 128>}, {pipeline_mode = #tpu.pipeline_mode<synchronous>, transform_indices = @transform_1, window_bounds = array<i64: 384, 128>}, {pipeline_mode = #tpu.pipeline_mode<synchronous>, transform_indices = @transform_2, window_bounds = array<i64: 1, 384>}, {transform_indices = @transform_3, window_bounds = array<i64: 1, 64, 128>}, {transform_indices = @transform_4, window_bounds = array<i64: 1, 64, 256>}]} {
    %c0 = arith.constant 0 : index
    %c0_0 = arith.constant 0 : index
    %c0_1 = arith.constant 0 : index
    %0 = vector.load %arg2[%c0, %c0_0, %c0_1] : memref<1x64x128xf32, #tpu.memory_space<vmem>>, vector<1x64x128xf32>
    %1 = vector.shape_cast %0 : vector<1x64x128xf32> to vector<64x128xf32>
    %c0_2 = arith.constant 0 : index
    %c0_3 = arith.constant 0 : index
    %2 = vector.load %arg3[%c0_2, %c0_3] : memref<384x128xf32, #tpu.memory_space<vmem>>, vector<384x128xf32>
    %cst = arith.constant dense<0.000000e+00> : vector<64x384xf32>
    %3 = tpu.matmul %1, %2, %cst {dimension_numbers = #tpu.dot_dimension_numbers<[1], [1], [0], [0], [0, 0, 1, 0], [], []>} : vector<64x128xf32>, vector<384x128xf32>, vector<64x384xf32> -> vector<64x384xf32>
    %c0_4 = arith.constant 0 : index
    %c0_5 = arith.constant 0 : index
    %4 = vector.load %arg4[%c0_4, %c0_5] : memref<1x384xf32, #tpu.memory_space<vmem>>, vector<1x384xf32>
    %5 = vector.broadcast %4 : vector<1x384xf32> to vector<64x384xf32>
    %6 = arith.addf %3, %5 : vector<64x384xf32>
    %7 = vector.extract_strided_slice %6 {offsets = [0, 0], sizes = [64, 128], strides = [1, 1]} : vector<64x384xf32> to vector<64x128xf32>
    %c0_6 = arith.constant 0 : index
    %c0_7 = arith.constant 0 : index
    %c0_8 = arith.constant 0 : index
    %8 = vector.load %arg5[%c0_6, %c0_7, %c0_8] : memref<1x64x128xf32, #tpu.memory_space<vmem>>, vector<1x64x128xf32>
    %9 = vector.shape_cast %8 : vector<1x64x128xf32> to vector<64x128xf32>
    %10 = vector.shape_cast %7 : vector<64x128xf32> to vector<1x64x128xf32>
    tpu.vector_store %arg5[%c0_6, %c0_7, %c0_8], %10 {strides = array<i32>} : memref<1x64x128xf32, #tpu.memory_space<vmem>>, vector<1x64x128xf32>,
    %11 = vector.extract_strided_slice %6 {offsets = [0, 128], sizes = [64, 256], strides = [1, 1]} : vector<64x384xf32> to vector<64x256xf32>
    %c0_9 = arith.constant 0 : index
    %c0_10 = arith.constant 0 : index
    %c0_11 = arith.constant 0 : index
    %12 = vector.load %arg6[%c0_9, %c0_10, %c0_11] : memref<1x64x256xf32, #tpu.memory_space<vmem>>, vector<1x64x256xf32>
    %13 = vector.shape_cast %12 : vector<1x64x256xf32> to vector<64x256xf32>
    %14 = vector.shape_cast %11 : vector<64x256xf32> to vector<1x64x256xf32>
    tpu.vector_store %arg6[%c0_9, %c0_10, %c0_11], %14 {strides = array<i32>} : memref<1x64x256xf32, #tpu.memory_space<vmem>>, vector<1x64x256xf32>,
    return
  }
  func.func @transform_0(%arg0: i32, %arg1: i32) -> (i32, i32, i32) {
    %c0_i32 = arith.constant 0 : i32
    %c0_i32_0 = arith.constant 0 : i32
    return %arg0, %arg1, %c0_i32 : i32, i32, i32
  }
  func.func @transform_1(%arg0: i32, %arg1: i32) -> (i32, i32) {
    %c0_i32 = arith.constant 0 : i32
    %c0_i32_0 = arith.constant 0 : i32
    %c0_i32_1 = arith.constant 0 : i32
    return %c0_i32, %c0_i32_0 : i32, i32
  }
  func.func @transform_2(%arg0: i32, %arg1: i32) -> (i32, i32) {
    %c0_i32 = arith.constant 0 : i32
    %c0_i32_0 = arith.constant 0 : i32
    %c0_i32_1 = arith.constant 0 : i32
    return %c0_i32, %c0_i32_0 : i32, i32
  }
  func.func @transform_3(%arg0: i32, %arg1: i32) -> (i32, i32, i32) {
    %c0_i32 = arith.constant 0 : i32
    %c0_i32_0 = arith.constant 0 : i32
    return %arg0, %arg1, %c0_i32 : i32, i32, i32
  }
  func.func @transform_4(%arg0: i32, %arg1: i32) -> (i32, i32, i32) {
    %c0_i32 = arith.constant 0 : i32
    %c0_i32_0 = arith.constant 0 : i32
    return %arg0, %arg1, %c0_i32 : i32, i32, i32
  }
}

</mosaic_0001>

<bundles_post_ra>
// kernel: tpu_custom_call.1
= control target key start
LH: loop header
LB: loop body
LE: loop exit
PB: predicated region body
PF: predicated region fallthrough
CT: control target
= control target key end

     0   :  { %s1645_s0 = inlined_call_operand.hbm [shape: f32[2,128,128], index: 0, kind: input, shape index: {}]   ;;  %s1646_s1 = inlined_call_operand.hbm [shape: f32[384,128], index: 1, kind: input, shape index: {}]   ;;  %s1647_s2 = inlined_call_operand.vmem [shape: f32[1,384], index: 2, kind: input, shape index: {}]   ;;  %s1648_s3 = inlined_call_operand.hbm [shape: f32[2,128,128], index: 3, kind: output, shape index: {0}]   ;;  %s1649_s4 = inlined_call_operand.hbm [shape: f32[2,128,256], index: 4, kind: output, shape index: {1}]  }
   0x1   :  { %1661 = sst [smem:[#allocation19_spill]] %s1646_s1 }
   0x2   :  { %10 = vsyncpa [#allocation3], 0 }
   0x3   :  { %12 = vsyncpa [#allocation3 + $0x1], 0 }
   0x4   :  { %13 = vsyncpa [#allocation6], 0 }
   0x5   :  { %14 = vsyncpa [#allocation4], 0 }
   0x6   :  { %16 = vsyncpa [#allocation4 + $0x1], 0 }
   0x7   :  { %17 = vsyncpa [#allocation9], 0 }
   0x8   :  { %19 = vsyncpa [#allocation9 + $0x1], 0  ;;  %s1290_s15 = smov 0   ;;  %s1292_s16 = smov 0  }
   0x9   :  { %s1294_s17 = smov 0   ;;  %s1296_s18 = smov 0  }
   0xa   :  { %s1298_s19 = smov 0   ;;  %s1300_s20 = smov 0  }
   0xb   :  { %s1302_s21 = smov 0   ;;  %s1304_s22 = smov 0  }
   0xc LB: > { %1662 = sst [smem:[#allocation14_spill]] %s1225_s15  ;;  %s755_s23 = sadd.s32 4294967295, %s1253_s22   ;;  %s1253_s22 = sphi %s1304_s22, %s25_s22   ;;  %s1249_s21 = sphi %s1302_s21, %s1693_s21   ;;  %s1245_s20 = sphi %s1300_s20, %s1687_s20   ;;  %s1241_s19 = sphi %s1298_s19, %s1692_s19   ;;  %s1237_s18 = sphi %s1296_s18, %s1686_s18   ;;  %s1233_s17 = sphi %s1294_s17, %s1691_s17   ;;  %s1229_s16 = sphi %s1292_s16, %s1690_s16   ;;  %s1225_s15 = sphi %s1290_s15, %s1689_s15  }
   0xd   : > { %1663 = sst [smem:[#allocation15_spill]] %s1245_s20  ;;  %s756_s24 = sadd.s32 4294967294, %s1253_s22  }
   0xe   : > { %p59_p0 = scmp.ne.s32.totalorder %s1229_s16, %s1225_s15  ;;  %p1334_p1 = scmp.eq.s32.totalorder %s755_s23, 0 }
   0xf   : > { %p1338_p2 = scmp.eq.s32.totalorder %s755_s23, 3  ;;  %p133_p3 = scmp.eq.s32.totalorder %s756_s24, 3 }
  0x10   : > { %s1664_s25 = scalar_select %p1334_p1, 1, 0 }
  0x11   : > { %s1665_s26 = scalar_select %p1338_p2, 1, 0 }
  0x12   : > { %p1344_p4 = por %p1334_p1, %p59_p0  ;;  %p757_p5 = scmp.ge.s32.totalorder %s1253_s22, 1 }
  0x13   : > { %p1349_p6 = por %p133_p3, %p59_p0  ;;  %p168_p7 = scmp.lt.s32.totalorder %s1253_s22, 5 }
  0x14   : > { %s1666_s27 = scalar_select %p1344_p4, 1, 0 }
  0x15   : > { %s1667_s28 = scalar_select %p1349_p6, 1, 0 }
  0x16   : > { %p1354_p8 = pnand %p757_p5, %p168_p7  ;;  %s1255_s30 = smov [#allocation5]  }
  0x17   : > { %1668 = sst [smem:[#allocation16_spill]] %s1667_s28  ;;  %s180_s5 = sshll.u32 %s1255_s30, 4  ;;  %s181_s5 = int_to_ptr.vmem [resolvable:$true] %s180_s5 }
  0x18   : > { %s1669_s29 = scalar_select %p1354_p8, 1, 0 }
  0x19   : > { %p971_p9 = pneg %p1354_p8  ;;  %s1671_s1 = sld [smem:[#allocation19_spill]] }
  0x1b   : > { %p1362_p10 = pnand %p971_p9, %p1334_p1 }
  0x1d   : > { %p1063_p12 = pneg %p1362_p10 }
  0x1f   : > { %s1061_s9 = scalar_lea.hbm %s1671_s1, 6144 }
  0x20   : > { %p1062_p11 = scmp.ne.s32.totalorder %s1671_s1, %s1061_s9  ;;  %p1068_p3 = scmp.lt.u32.totalorder %s1061_s9, %s1671_s1 }
  0x22   : > { %p1064_p13 = pnand %p1063_p12, %p1062_p11 }
  0x24   : > { %p1065_p0 = pneg %p1064_p13 }
  0x26   : > { %p1070_p5 = pnand %p1068_p3, %p1065_p0 }
  0x28   : > { %1073 = shalt.err (!%p1070_p5)
}
  0x29   : > { %s1074_s14 = scalar_lea.vmem %s181_s5, 6144  ;;  %p1082_p1 = scmp.lt.s32.totalorder %s181_s5, %s181_s5 }
  0x2a   : > { %p1075_p7 = scmp.ne.s32.totalorder %s181_s5, %s1074_s14  ;;  %p1083_p4 = scmp.lt.s32.totalorder %s1074_s14, %s1074_s14 }
  0x2c   : > { %p1077_p9 = pnand %p1075_p7, %p1063_p12  ;;  %p1084_p8 = por %p1083_p4, %p1082_p1 }
  0x2e   : > { %p1078_p6 = pneg %p1077_p9 }
  0x30   : > { %p1085_p2 = pnand %p1084_p8, %p1078_p6 }
  0x32   : > { %1088 = shalt.err (!%p1085_p2)
}
  0x33   : > { %s1654_s23 = smov 128   ;;  %s1655_s24 = smov 8  }
  0x34   : > { %974 = dma.hbm_to_vmem [thread:$0]  (!%p1362_p10), %s1671_s1, 6144, %s181_s5, [#allocation6], %s1654_s23, %s1654_s23, %s1655_s24  }
  0x35   : > { %s34_s8 = sadd.s32 1, %s1245_s20  ;;  %s37_s9 = sadd.s32 1, %s1249_s21 }
  0x36   : > { %p35_p1 = scmp.ge.s32.totalorder %s34_s8, 2  ;;  %s46_s10 = sadd.s32 1, %s1233_s17 }
  0x37   : > { %p53_p2 = scmp.ne.s32.totalorder %s1233_s17, %s1229_s16  ;;  %p54_p4 = scmp.eq.s32.totalorder %s1253_s22, 0 }
  0x38   : > { %s1695_s8 = smov (%p35_p1, %s34_s8), 0  ;;  %s1697_s9 = smov (!%p35_p1, %s37_s9), %s1249_s21 }
  0x39   : > { %1672 = sst [smem:[#allocation17_spill]] %s1695_s8  ;;  %s42_s6 = ssub.s32 %s1245_s20, %s1695_s8 }
  0x3a   : > { %p39_p6 = scmp.ge.s32.totalorder %s1697_s9, 2  ;;  %p1673_p8 = scmp.ne.s32.totalorder %s1665_s26, 0 }
  0x3b   : > { %p1402_p10 = por %p54_p4, %p53_p2  ;;  %p987_p12 = scmp.lt.s32.totalorder %s1253_s22, 4 }
  0x3c   : > { %p1398_p11 = por %p1673_p8, %p53_p2  ;;  %s1699_s9 = smov (%p39_p6, %s1697_s9), 0 }
  0x3d   : > { %1676 = sst [smem:[#allocation18_spill]] %s1699_s9  ;;  %s197_s12 = sand.u32 1, %s1233_s17  }
  0x3e   : > { %s761_s13 = sshll.u32 %s1245_s20, 3  ;;  %s41_s14 = ssub.s32 %s1249_s21, %s1699_s9 }
  0x3f   : > { %s43_s30 = sor.u32 %s42_s6, %s41_s14  ;;  %s760_s7 = sshll.u32 %s197_s12, 6 }
  0x40   : > { %p44_p13 = scmp.eq.s32.totalorder %s43_s30, 0  ;;  %s762_s26 = sshll.u32 %s1249_s21, 4 }
  0x41   : > { %s201_s23 = scalar_lea.vmem [#allocation2], %s760_s7  ;;  %s207_s8 = sadd.s32 %s762_s26, %s761_s13 }
  0x42   : > { %s210_s24 = sshll.u32 %s201_s23, 4  ;;  %s763_s28 = sshll.u32 %s207_s8, 7  ;;  %s1417_s24 = int_to_ptr.vmem [resolvable:$true] %s210_s24 }
  0x43   : > { %s1415_s1 = scalar_select %p44_p13, %s1233_s17, %s46_s10  }
  0x44   : > { %p1423_p0 = pnand %p987_p12, %p1402_p10  ;;  %s1430_s6 = scalar_lea.hbm %s1645_s0, %s763_s28 }
  0x45   : > { %s1432_s23 = scalar_lea.sflag [#allocation3], %s197_s12  ;;  %s1089_s8 = scalar_lea.hbm %s1430_s6, 1024 }
  0x46   : > { %p1090_p3 = scmp.ne.s32.totalorder %s1430_s6, %s1089_s8  ;;  %p1091_p5 = pneg %p1423_p0 }
  0x47   : > { %s1094_s9 = scalar_lea.hbm %s1645_s0, 4096  ;;  %p1095_p1 = scmp.lt.u32.totalorder %s1430_s6, %s1645_s0 }
  0x48   : > { %p1092_p7 = pnand %p1091_p5, %p1090_p3  ;;  %p1096_p2 = scmp.lt.u32.totalorder %s1094_s9, %s1089_s8 }
  0x49   : > { %p1098_p6 = scmp.lt.u32.totalorder %s1089_s8, %s1430_s6 }
  0x4a   : > { %p1093_p9 = pneg %p1092_p7  ;;  %p1097_p4 = por %p1096_p2, %p1095_p1 }
  0x4c   : > { %p1099_p8 = por %p1098_p6, %p1097_p4 }
  0x4e   : > { %p1100_p10 = pnand %p1099_p8, %p1093_p9 }
  0x50   : > { %1103 = shalt.err (!%p1100_p10)
}
  0x51   : > { %s1104_s12 = scalar_lea.vmem %s1417_s24, 1024  ;;  %s1258_s13 = smov [#allocation2]  }
  0x52   : > { %p1105_p12 = scmp.ne.s32.totalorder %s1417_s24, %s1104_s12  ;;  %s1109_s14 = sshll.u32 %s1258_s13, 4  ;;  %s1110_s14 = int_to_ptr.vmem [resolvable:$false] %s1109_s14 }
  0x53   : > { %s1111_s30 = scalar_lea.vmem %s1110_s14, 2048  ;;  %p1112_p7 = scmp.lt.s32.totalorder %s1417_s24, %s1110_s14 }
  0x54   : > { %p1107_p13 = pnand %p1105_p12, %p1091_p5  ;;  %p1113_p1 = scmp.lt.s32.totalorder %s1111_s30, %s1104_s12 }
  0x56   : > { %p1108_p3 = pneg %p1107_p13  ;;  %p1114_p2 = por %p1113_p1, %p1112_p7 }
  0x58   : > { %p1115_p4 = pnand %p1114_p2, %p1108_p3 }
  0x5a   : > { %1118 = shalt.err (!%p1115_p4)
}
  0x5b   : > { %s1678_s7 = smov 8   ;;  %s1679_s26 = smov 128  }
  0x5c   : > { %978 = dma.hbm_to_vmem [thread:$0]  (!%p1423_p0), %s1430_s6, 1024, %s1417_s24, %s1432_s23, %s1679_s26, %s1679_s26, %s1678_s7  }
  0x5d   : > { %p1680_p5 = scmp.ne.s32.totalorder %s1669_s29, 0 }
  0x5e   : > { %s1466_s8 = sand.u32 (!%p1680_p5), 1, %s1229_s16   ;;  %p1681_p9 = scmp.ne.s32.totalorder (!%p1680_p5), %s1666_s27, 0 }
  0x5f   : > { %222 = sbr.rel (%p1680_p5) target bundleno = 455 (0x1c7), region = 32  ;;  %s765_s10 = sshll.u32 (!%p1680_p5), %s1466_s8, 6 }
  0x60   : > { %s225_s20 = scalar_lea.sflag (!%p1680_p5), [#allocation3], %s1466_s8  ;;  %s1472_s15 = scalar_lea.vmem (!%p1680_p5), [#allocation2], %s765_s10 }
  0x66   : > { %1208 = dma.done.wait (%p1681_p9), %s225_s20, 1024  }
  0x67   : > { %1210 = vsyncadd (%p1681_p9), %s225_s20, 4294966272  ;;  %p1682_p0 = scmp.ne.s32.totalorder %s1664_s25, 0 }
  0x69   : > { %1212 = dma.done.wait (%p1682_p0), [#allocation6], 6144  }
  0x6a   : > { %1214 = vsyncadd (%p1682_p0), [#allocation6], 4294961152  ;;  %v289_v0 = vld [vmem:[#allocation5 + $0x80] sm:$0xff]  ;;  %v290_v1 = vld [vmem:[#allocation5 + $0x88] sm:$0xff]  ;;  %s768_s29 = sshll.u32 %s1466_s8, 7  ;;  %s1507_s24 = scalar_lea.vmem [#allocation7], %s765_s10 }
  0x6b   : > { %v273_v2 = vld [vmem:[#allocation5] sm:$0xff]  ;;  %v897_v3 = vpack.c.bf16 %v290_v1, %v289_v0  ;;  %v274_v4 = vld [vmem:[#allocation5 + $0x8] sm:$0xff]  ;;  %v291_v5 = vld [vmem:[#allocation5 + $0x90] sm:$0xff]  ;;  %s1510_s6 = scalar_lea.vmem [#allocation8], %s768_s29  ;;  %s771_s23 = sshll.u32 %s1237_s18, 3 }
  0x6c   : > { %v292_v6 = vld [vmem:[#allocation5 + $0x98] sm:$0xff]  ;;  %v899_v7 = vpack.c.bf16 %v274_v4, %v273_v2  ;;  %v305_v9 = vld [vmem:[#allocation5 + $0x100] sm:$0xff]  ;;  %v306_v10 = vld [vmem:[#allocation5 + $0x108] sm:$0xff]  ;;  %s772_s9 = sshll.u32 %s1241_s19, 4  ;;  %s780_s28 = sshll.u32 %s1237_s18, 4 }
  0x6d   : > { %v901_v8 = vpack.c.bf16 %v292_v6, %v291_v5  ;;  %898 = vmatprep.subr.bf16.mxu0 %v897_v3  ;;  %v929_v11 = vpack.c.bf16 %v306_v10, %v305_v9  ;;  %v307_v12 = vld [vmem:[#allocation5 + $0x110] sm:$0xff]  ;;  %v276_v14 = vld [vmem:[#allocation5 + $0x18] sm:$0xff]  ;;  %v293_v16 = vld [vmem:[#allocation5 + $0xa0] sm:$0xff]  ;;  %s776_s5 = sshll.u32 %s1241_s19, 5  ;;  %s598_s12 = sadd.s32 %s772_s9, %s771_s23 }
  0x6e   : > { %900 = vmatpush3.bf16.xpose.msra.mxu0 %v899_v7  ;;  %v275_v13 = vld [vmem:[#allocation5 + $0x10] sm:$0xff]  ;;  %v308_v15 = vld [vmem:[#allocation5 + $0x118] sm:$0xff]  ;;  %v294_v17 = vld [vmem:[#allocation5 + $0xa8] sm:$0xff]  ;;  %s601_s13 = sshll.u32 %s1507_s24, 4  ;;  %s617_s14 = sadd.s32 %s780_s28, %s776_s5  ;;  %s1546_s13 = int_to_ptr.vmem [resolvable:$true] %s601_s13 }
  0x6f   : > { %902 = vmatprep.subr.bf16.mxu0 %v901_v8  ;;  %930 = vmatprep.subr.bf16.mxu1 %v929_v11  ;;  %v933_v18 = vpack.c.bf16 %v308_v15, %v307_v12  ;;  %v903_v19 = vpack.c.bf16 %v276_v14, %v275_v13  ;;  %v905_v20 = vpack.c.bf16 %v294_v17, %v293_v16  ;;  %v309_v21 = vld [vmem:[#allocation5 + $0x120] sm:$0xff]  ;;  %v310_v22 = vld [vmem:[#allocation5 + $0x128] sm:$0xff]  ;;  %v295_v26 = vld [vmem:[#allocation5 + $0xb0] sm:$0xff]  ;;  %v323_v16 = vlaneseq  ;;  %s773_s30 = sshll.u32 %s598_s12, 7  ;;  %s777_s18 = sshll.u32 %s617_s14, 7 }
  0x70   : > { %932 = vmatpush3.bf16.xpose.msra.mxu1 %v929_v11  ;;  %v937_v23 = vpack.c.bf16 %v310_v22, %v309_v21  ;;  %v277_v24 = vld [vmem:[#allocation5 + $0x20] sm:$0xff]  ;;  %v278_v25 = vld [vmem:[#allocation5 + $0x28] sm:$0xff]  ;;  %v296_v27 = vld [vmem:[#allocation5 + $0xb8] sm:$0xff]  ;;  %s620_s19 = sshll.u32 %s1510_s6, 4  ;;  %s1555_s10 = scalar_lea.hbm %s1648_s3, %s773_s30  ;;  %s1564_s19 = int_to_ptr.vmem [resolvable:$true] %s620_s19 }
  0x71   : > { %934 = vmatprep.subr.bf16.mxu1 %v933_v18  ;;  %v1483_v28 = vld [vmem:[%s1472_s15] sm:$0xff]  ;;  %v907_v29 = vpack.c.bf16 %v278_v25, %v277_v24  ;;  %v909_v30 = vpack.c.bf16 %v296_v27, %v295_v26  ;;  %v311_v31 = vld [vmem:[#allocation5 + $0x130] sm:$0xff]  ;;  %v312_v32 = vld [vmem:[#allocation5 + $0x138] sm:$0xff]  ;;  %v324_v17 = vshrl.u32 %v323_v16, 7  ;;  %s1562_s25 = scalar_lea.hbm %s1649_s4, %s777_s18  ;;  %s581_s27 = scalar_lea.sflag [#allocation4], %s1466_s8 }
  0x72   : > { %813 = vmatprep.mubr.f32.mxu0 %v1483_v28  ;;  %885 = vmatprep.mubr.f32.mxu1 %v1483_v28  ;;  %v941_v33 = vpack.c.bf16 %v312_v32, %v311_v31  ;;  %v279_v34 = vld [vmem:[#allocation5 + $0x30] sm:$0xff]  ;;  %v280_v35 = vld [vmem:[#allocation5 + $0x38] sm:$0xff]  ;;  %v297_v36 = vld [vmem:[#allocation5 + $0xc0] sm:$0xff]  ;;  %s1119_s29 = scalar_lea.vmem %s1546_s13, 1024  ;;  %s1259_s23 = smov [#allocation7]  }
  0x73   : > { %v298_v37 = vld [vmem:[#allocation5 + $0xc8] sm:$0xff]  ;;  %v911_v38 = vpack.c.bf16 %v280_v35, %v279_v34  ;;  %v313_v40 = vld [vmem:[#allocation5 + $0x140] sm:$0xff]  ;;  %v299_v45 = vld [vmem:[#allocation5 + $0xd0] sm:$0xff]  ;;  %v333_v21 = vsub.s32 2, %v324_v17  ;;  %p1120_p6 = scmp.ne.s32.totalorder %s1546_s13, %s1119_s29  ;;  %s1123_s9 = sshll.u32 %s1259_s23, 4  ;;  %s1124_s9 = int_to_ptr.vmem [resolvable:$false] %s1123_s9 }
  0x74   : > { %v913_v39 = vpack.c.bf16 %v298_v37, %v297_v36  ;;  %v314_v41 = vld [vmem:[#allocation5 + $0x148] sm:$0xff]  ;;  %v281_v43 = vld [vmem:[#allocation5 + $0x40] sm:$0xff]  ;;  %v300_v46 = vld [vmem:[#allocation5 + $0xd8] sm:$0xff]  ;;  %s1125_s28 = scalar_lea.vmem %s1124_s9, 2048  ;;  %p1126_p12 = scmp.lt.s32.totalorder %s1546_s13, %s1124_s9 }
  0x75   : > { %v945_v42 = vpack.c.bf16 %v314_v41, %v313_v40  ;;  %v282_v44 = vld [vmem:[#allocation5 + $0x48] sm:$0xff]  ;;  %v917_v48 = vpack.c.bf16 %v300_v46, %v299_v45  ;;  %v315_v49 = vld [vmem:[#allocation5 + $0x150] sm:$0xff]  ;;  %v316_v50 = vld [vmem:[#allocation5 + $0x158] sm:$0xff]  ;;  %p1121_p8 = pnand %p1120_p6, %p1398_p11  ;;  %p1127_p13 = scmp.lt.s32.totalorder %s1125_s28, %s1119_s29 }
  0x76   : > { %904 = vmatpush3.bf16.xpose.msra.mxu0 %v903_v19  ;;  %v915_v47 = vpack.c.bf16 %v282_v44, %v281_v43  ;;  %v949_v51 = vpack.c.bf16 %v316_v50, %v315_v49  ;;  %v283_v52 = vld [vmem:[#allocation5 + $0x50] sm:$0xff]  ;;  %v284_v53 = vld [vmem:[#allocation5 + $0x58] sm:$0xff]  ;;  %v301_v54 = vld [vmem:[#allocation5 + $0xe0] sm:$0xff] }
  0x77   : > { %906 = vmatprep.subr.bf16.mxu0 %v905_v20  ;;  %v302_v55 = vld [vmem:[#allocation5 + $0xe8] sm:$0xff]  ;;  %v919_v56 = vpack.c.bf16 %v284_v53, %v283_v52  ;;  %v317_v58 = vld [vmem:[#allocation5 + $0x160] sm:$0xff]  ;;  %v303_v63 = vld [vmem:[#allocation5 + $0xf0] sm:$0xff]  ;;  %v329_v20 = vsub.s32 1, %v324_v17  ;;  %p1122_p10 = pneg %p1121_p8  ;;  %p1128_p3 = por %p1127_p13, %p1126_p12 }
  0x78   : > { %936 = vmatpush3.bf16.xpose.msra.mxu1 %v933_v18  ;;  %v921_v57 = vpack.c.bf16 %v302_v55, %v301_v54  ;;  %v318_v59 = vld [vmem:[#allocation5 + $0x168] sm:$0xff]  ;;  %v285_v61 = vld [vmem:[#allocation5 + $0x60] sm:$0xff]  ;;  %v304_v0 = vld [vmem:[#allocation5 + $0xf8] sm:$0xff]  ;;  %v325_v18 = vsub.s32 0, %v324_v17 }
  0x79   : > { %938 = vmatprep.subr.bf16.mxu1 %v937_v23  ;;  %v953_v60 = vpack.c.bf16 %v318_v59, %v317_v58  ;;  %v286_v62 = vld [vmem:[#allocation5 + $0x68] sm:$0xff]  ;;  %v925_v2 = vpack.c.bf16 %v304_v0, %v303_v63  ;;  %v319_v3 = vld [vmem:[#allocation5 + $0x170] sm:$0xff]  ;;  %v320_v4 = vld [vmem:[#allocation5 + $0x178] sm:$0xff]  ;;  %p1129_p7 = pnand %p1128_p3, %p1122_p10 }
  0x7a   : > { %v923_v1 = vpack.c.bf16 %v286_v62, %v285_v61  ;;  %v957_v5 = vpack.c.bf16 %v320_v4, %v319_v3  ;;  %v287_v6 = vld [vmem:[#allocation5 + $0x70] sm:$0xff]  ;;  %v288_v7 = vld [vmem:[#allocation5 + $0x78] sm:$0xff]  ;;  %v266_v9 = vld [vmem:[%s1472_s15 + $0x8] sm:$0xff] }
  0x7b   : > { %v927_v8 = vpack.c.bf16 %v288_v7, %v287_v6  ;;  %v267_v10 = vld [vmem:[%s1472_s15 + $0x10] sm:$0xff]  ;;  %v268_v11 = vld [vmem:[%s1472_s15 + $0x18] sm:$0xff]  ;;  %v269_v12 = vld [vmem:[%s1472_s15 + $0x20] sm:$0xff] }
  0x7c   : > { %v270_v13 = vld [vmem:[%s1472_s15 + $0x28] sm:$0xff]  ;;  %v271_v14 = vld [vmem:[%s1472_s15 + $0x30] sm:$0xff]  ;;  %v272_v15 = vld [vmem:[%s1472_s15 + $0x38] sm:$0xff] }
  0x7d   : > { %v321_v19 = vld [vmem:[%s1647_s2] sm:$0x7] }
  0x7e   : > { %908 = vmatpush3.bf16.xpose.msra.mxu0 %v907_v29  ;;  %v1498_v22 = vrot.slane %v321_v19, %v325_v18  ;;  %v334_v25 = vrot.slane %v321_v19, %v333_v21 }
  0x7f   : > { %910 = vmatprep.subr.bf16.mxu0 %v909_v30 }
  0x80   : > { %940 = vmatpush3.bf16.xpose.msra.mxu1 %v937_v23  ;;  %v1501_v23 = vrot.slane %v321_v19, %v329_v20 }
  0x81   : > { %942 = vmatprep.subr.bf16.mxu1 %v941_v33 }
  0x86   : > { %912 = vmatpush3.bf16.xpose.msra.mxu0 %v911_v38 }
  0x87   : > { %914 = vmatprep.subr.bf16.mxu0 %v913_v39 }
  0x88   : > { %944 = vmatpush3.bf16.xpose.msra.mxu1 %v941_v33 }
  0x89   : > { %946 = vmatprep.subr.bf16.mxu1 %v945_v42 }
  0x8e   : > { %916 = vmatpush3.bf16.xpose.msra.mxu0 %v915_v47 }
  0x8f   : > { %918 = vmatprep.subr.bf16.mxu0 %v917_v48 }
  0x90   : > { %948 = vmatpush3.bf16.xpose.msra.mxu1 %v945_v42 }
  0x91   : > { %950 = vmatprep.subr.bf16.mxu1 %v949_v51 }
  0x96   : > { %920 = vmatpush3.bf16.xpose.msra.mxu0 %v919_v56 }
  0x97   : > { %922 = vmatprep.subr.bf16.mxu0 %v921_v57 }
  0x98   : > { %952 = vmatpush3.bf16.xpose.msra.mxu1 %v949_v51 }
  0x99   : > { %954 = vmatprep.subr.bf16.mxu1 %v953_v60 }
  0x9e   : > { %924 = vmatpush3.bf16.xpose.msra.mxu0 %v923_v1 }
  0x9f   : > { %926 = vmatprep.subr.bf16.mxu0 %v925_v2 }
  0xa0   : > { %956 = vmatpush3.bf16.xpose.msra.mxu1 %v953_v60 }
  0xa1   : > { %958 = vmatprep.subr.bf16.mxu1 %v957_v5 }
  0xa6   : > { %928 = vmatpush3.bf16.xpose.msra.mxu0 %v927_v8 }
  0xa8   : > { %960 = vmatpush3.bf16.xpose.msra.mxu1 %v957_v5 }
  0xad   : > { %814 = vmatmul.mubr.f32.vlgmr.msra.gmra.mrb[0].mxu0 %v1483_v28 }
  0xae   : > { %815 = vmatprep.mubr.f32.mxu0 %v266_v9 }
  0xaf   : > { %886 = vmatmul.mubr.f32.vlgmr.msra.gmra.mrb[0].mxu1 %v266_v9 }
  0xb0   : > { %888 = vmatprep.mubr.f32.mxu1 %v267_v10 }
  0xb1   : > { %816 = vmatmul.mubr.f32.gmra.mrb[2].mxu0 %v266_v9 }
  0xb2   : > { %817 = vmatprep.mubr.f32.mxu0 %v267_v10 }
  0xb3   : > { %889 = vmatmul.mubr.f32.gmra.mrb[2].mxu1 %v268_v11 }
  0xb4   : > { %891 = vmatprep.mubr.f32.mxu1 %v269_v12 }
  0xb5   : > { %818 = vmatmul.mubr.f32.gmra.mrb[4].mxu0 %v267_v10 }
  0xb6   : > { %819 = vmatprep.mubr.f32.mxu0 %v268_v11 }
  0xb7   : > { %892 = vmatmul.mubr.f32.gmra.mrb[4].mxu1 %v270_v13 }
  0xb8   : > { %894 = vmatprep.mubr.f32.mxu1 %v271_v14 }
  0xb9   : > { %820 = vmatmul.mubr.f32.gmra.mrb[6].mxu0 %v268_v11 }
  0xba   : > { %821 = vmatprep.mubr.f32.mxu0 %v269_v12 }
  0xbb   : > { %895 = vmatmul.mubr.f32.gmra.mrb[6].mxu1 %v272_v15 }
  0xbd   : > { %822 = vmatmul.mubr.f32.gmra.mrb[8].mxu0 %v269_v12 }
  0xbe   : > { %823 = vmatprep.mubr.f32.mxu0 %v270_v13 }
  0xc1   : > { %824 = vmatmul.mubr.f32.gmra.mrb[10].mxu0 %v270_v13 }
  0xc2   : > { %825 = vmatprep.mubr.f32.mxu0 %v271_v14 }
  0xc5   : > { %826 = vmatmul.mubr.f32.gmra.mrb[12].mxu0 %v271_v14 }
  0xc6   : > { %827 = vmatprep.mubr.f32.mxu0 %v272_v15 }
  0xc9   : > { %828 = vmatmul.mubr.f32.gmra.mrb[14].mxu0 %v272_v15 }
 0x180   : > { %v404_v24 = vpop.f32.mrb[0].mxu0 }
 0x181   : > { %v405_v26 = vadd.f32 %v404_v24, %v1498_v22  ;;  %v406_v27 = vpop.f32.mrb[1].mxu0 }
 0x182   : > { %v407_v28 = vadd.f32 %v406_v27, %v1501_v23  ;;  %v887_v29 = vpop.f32.mrb[0].mxu1 }
 0x183   : > { %556 = vst [vmem:[%s1507_s24] sm:$0xff] %v405_v26  ;;  %v523_v31 = vadd.f32 %v887_v29, %v334_v25  ;;  %v517_v32 = vpop.f32.mrb[1].mxu1 }
 0x184   : > { %564 = vst [vmem:[%s1510_s6] sm:$0xff] %v407_v28  ;;  %v410_v30 = vpop.f32.mrb[2].mxu0  ;;  %v518_v35 = vadd.f32 %v517_v32, %v334_v25 }
 0x185   : > { %v411_v33 = vadd.f32 %v410_v30, %v1498_v22  ;;  %v412_v34 = vpop.f32.mrb[3].mxu0  ;;  %567 = vst [vmem:[%s1510_s6 + $0x18] sm:$0xff] %v523_v31 }
 0x186   : > { %v413_v36 = vadd.f32 %v412_v34, %v1501_v23  ;;  %565 = vst [vmem:[%s1510_s6 + $0x8] sm:$0xff] %v518_v35  ;;  %v890_v37 = vpop.f32.mrb[2].mxu1 }
 0x187   : > { %557 = vst [vmem:[%s1507_s24 + $0x8] sm:$0xff] %v411_v33  ;;  %v533_v39 = vadd.f32 %v890_v37, %v334_v25  ;;  %v527_v40 = vpop.f32.mrb[3].mxu1 }
 0x188   : > { %566 = vst [vmem:[%s1510_s6 + $0x10] sm:$0xff] %v413_v36  ;;  %v416_v38 = vpop.f32.mrb[4].mxu0  ;;  %v528_v43 = vadd.f32 %v527_v40, %v334_v25 }
 0x189   : > { %v417_v41 = vadd.f32 %v416_v38, %v1498_v22  ;;  %v418_v42 = vpop.f32.mrb[5].mxu0  ;;  %571 = vst [vmem:[%s1510_s6 + $0x38] sm:$0xff] %v533_v39 }
 0x18a   : > { %v419_v44 = vadd.f32 %v418_v42, %v1501_v23  ;;  %569 = vst [vmem:[%s1510_s6 + $0x28] sm:$0xff] %v528_v43  ;;  %v893_v45 = vpop.f32.mrb[4].mxu1 }
 0x18b   : > { %558 = vst [vmem:[%s1507_s24 + $0x10] sm:$0xff] %v417_v41  ;;  %v543_v47 = vadd.f32 %v893_v45, %v334_v25  ;;  %v537_v48 = vpop.f32.mrb[5].mxu1 }
 0x18c   : > { %568 = vst [vmem:[%s1510_s6 + $0x20] sm:$0xff] %v419_v44  ;;  %v422_v46 = vpop.f32.mrb[6].mxu0  ;;  %v538_v51 = vadd.f32 %v537_v48, %v334_v25 }
 0x18d   : > { %v423_v49 = vadd.f32 %v422_v46, %v1498_v22  ;;  %v424_v50 = vpop.f32.mrb[7].mxu0  ;;  %575 = vst [vmem:[%s1510_s6 + $0x58] sm:$0xff] %v543_v47 }
 0x18e   : > { %v425_v52 = vadd.f32 %v424_v50, %v1501_v23  ;;  %573 = vst [vmem:[%s1510_s6 + $0x48] sm:$0xff] %v538_v51  ;;  %v896_v53 = vpop.f32.mrb[6].mxu1 }
 0x18f   : > { %559 = vst [vmem:[%s1507_s24 + $0x18] sm:$0xff] %v423_v49  ;;  %v553_v55 = vadd.f32 %v896_v53, %v334_v25  ;;  %v547_v56 = vpop.f32.mrb[7].mxu1 }
 0x190   : > { %570 = vst [vmem:[%s1510_s6 + $0x30] sm:$0xff] %v425_v52  ;;  %v428_v54 = vpop.f32.mrb[8].mxu0  ;;  %v548_v59 = vadd.f32 %v547_v56, %v334_v25 }
 0x191   : > { %v429_v57 = vadd.f32 %v428_v54, %v1498_v22  ;;  %v430_v58 = vpop.f32.mrb[9].mxu0  ;;  %579 = vst [vmem:[%s1510_s6 + $0x78] sm:$0xff] %v553_v55 }
 0x192   : > { %v431_v60 = vadd.f32 %v430_v58, %v1501_v23  ;;  %577 = vst [vmem:[%s1510_s6 + $0x68] sm:$0xff] %v548_v59 }
 0x193   : > { %560 = vst [vmem:[%s1507_s24 + $0x20] sm:$0xff] %v429_v57 }
 0x194   : > { %572 = vst [vmem:[%s1510_s6 + $0x40] sm:$0xff] %v431_v60  ;;  %v434_v61 = vpop.f32.mrb[10].mxu0 }
 0x195   : > { %v435_v62 = vadd.f32 %v434_v61, %v1498_v22  ;;  %v436_v63 = vpop.f32.mrb[11].mxu0 }
 0x196   : > { %v437_v0 = vadd.f32 %v436_v63, %v1501_v23 }
 0x197   : > { %561 = vst [vmem:[%s1507_s24 + $0x28] sm:$0xff] %v435_v62 }
 0x198   : > { %574 = vst [vmem:[%s1510_s6 + $0x50] sm:$0xff] %v437_v0  ;;  %v440_v1 = vpop.f32.mrb[12].mxu0 }
 0x199   : > { %v441_v2 = vadd.f32 %v440_v1, %v1498_v22  ;;  %v442_v3 = vpop.f32.mrb[13].mxu0 }
 0x19a   : > { %v443_v4 = vadd.f32 %v442_v3, %v1501_v23 }
 0x19b   : > { %562 = vst [vmem:[%s1507_s24 + $0x30] sm:$0xff] %v441_v2 }
 0x19c   : > { %576 = vst [vmem:[%s1510_s6 + $0x60] sm:$0xff] %v443_v4  ;;  %v446_v5 = vpop.f32.mrb[14].mxu0 }
 0x19d   : > { %v447_v6 = vadd.f32 %v446_v5, %v1498_v22  ;;  %v448_v7 = vpop.f32.mrb[15].mxu0 }
 0x19e   : > { %v449_v8 = vadd.f32 %v448_v7, %v1501_v23 }
 0x19f   : > { %563 = vst [vmem:[%s1507_s24 + $0x38] sm:$0xff] %v447_v6 }
 0x1a0   : > { %578 = vst [vmem:[%s1510_s6 + $0x70] sm:$0xff] %v449_v8 }
 0x1a1   : > { %1132 = shalt.err (!%p1129_p7)
}
 0x1a2   : > { %s1133_s24 = scalar_lea.hbm %s1555_s10, 1024  ;;  %s1137_s12 = scalar_lea.hbm %s1648_s3, 4096 }
 0x1a3   : > { %p1134_p1 = scmp.ne.s32.totalorder %s1555_s10, %s1133_s24  ;;  %p1138_p5 = scmp.lt.u32.totalorder %s1555_s10, %s1648_s3 }
 0x1a4   : > { %p1139_p9 = scmp.lt.u32.totalorder %s1137_s12, %s1133_s24  ;;  %p1141_p6 = scmp.lt.u32.totalorder %s1133_s24, %s1555_s10 }
 0x1a5   : > { %p1135_p2 = pnand %p1134_p1, %p1398_p11 }
 0x1a6   : > { %p1140_p0 = por %p1139_p9, %p1138_p5 }
 0x1a7   : > { %p1136_p4 = pneg %p1135_p2 }
 0x1a8   : > { %p1142_p8 = por %p1141_p6, %p1140_p0 }
 0x1aa   : > { %p1143_p10 = pnand %p1142_p8, %p1136_p4 }
 0x1ac   : > { %1146 = shalt.err (!%p1143_p10)
}
 0x1ad   : > { %s1260_s18 = smov 128   ;;  %s1261_s7 = smov 8  }
 0x1ae   : > { %967 = dma.vmem_to_hbm [thread:$0]  (%p1398_p11), %s1546_s13, 1024, %s1555_s10, %s581_s27, %s1260_s18, %s1260_s18, %s1261_s7  }
 0x1af   : > { %s586_s26 = scalar_lea.sflag [#allocation9], %s1466_s8  ;;  %s1147_s20 = scalar_lea.vmem %s1564_s19, 2048 }
 0x1b0   : > { %p1148_p12 = scmp.ne.s32.totalorder %s1564_s19, %s1147_s20  ;;  %s1262_s15 = smov [#allocation8]  }
 0x1b1   : > { %s1151_s29 = sshll.u32 %s1262_s15, 4  ;;  %s1152_s29 = int_to_ptr.vmem [resolvable:$false] %s1151_s29 }
 0x1b2   : > { %p1149_p13 = pnand %p1148_p12, %p1398_p11  ;;  %s1153_s23 = scalar_lea.vmem %s1152_s29, 4096 }
 0x1b3   : > { %p1154_p7 = scmp.lt.s32.totalorder %s1564_s19, %s1152_s29  ;;  %p1155_p1 = scmp.lt.s32.totalorder %s1153_s23, %s1147_s20 }
 0x1b4   : > { %p1150_p3 = pneg %p1149_p13 }
 0x1b5   : > { %p1156_p2 = por %p1155_p1, %p1154_p7 }
 0x1b7   : > { %p1157_p4 = pnand %p1156_p2, %p1150_p3 }
 0x1b9   : > { %1160 = shalt.err (!%p1157_p4)
}
 0x1ba   : > { %s1161_s13 = scalar_lea.hbm %s1562_s25, 2048  ;;  %s1165_s9 = scalar_lea.hbm %s1649_s4, 8192 }
 0x1bb   : > { %p1162_p5 = scmp.ne.s32.totalorder %s1562_s25, %s1161_s13  ;;  %p1166_p6 = scmp.lt.u32.totalorder %s1562_s25, %s1649_s4 }
 0x1bc   : > { %p1167_p8 = scmp.lt.u32.totalorder %s1165_s9, %s1161_s13  ;;  %p1169_p12 = scmp.lt.u32.totalorder %s1161_s13, %s1562_s25 }
 0x1bd   : > { %p1163_p9 = pnand %p1162_p5, %p1398_p11 }
 0x1be   : > { %p1168_p10 = por %p1167_p8, %p1166_p6 }
 0x1bf   : > { %p1164_p0 = pneg %p1163_p9 }
 0x1c0   : > { %p1170_p13 = por %p1169_p12, %p1168_p10 }
 0x1c2   : > { %p1171_p3 = pnand %p1170_p13, %p1164_p0 }
 0x1c4   : > { %1174 = shalt.err (!%p1171_p3)
}
 0x1c5   : > { %s1263_s6 = smov 256   ;;  %s1264_s5 = smov 16  }
 0x1c6   : > { %968 = dma.vmem_to_hbm [thread:$0]  (%p1398_p11), %s1564_s19, 2048, %s1562_s25, %s586_s26, %s1263_s6, %s1263_s6, %s1264_s5  }
 0x1c7 PF: > { %s1683_s12 = sld [smem:[#allocation14_spill]]  ;;  %s1684_s14 = sld [smem:[#allocation16_spill]] }
 0x1c8   : > { %p989_p7 = scmp.ge.s32.totalorder %s1253_s22, 2 }
 0x1cd   : > { %s635_s30 = sand.u32 1, %s1683_s12   ;;  %p1685_p1 = scmp.ne.s32.totalorder %s1684_s14, 0 }
 0x1ce   : > { %s636_s18 = scalar_lea.sflag [#allocation4], %s635_s30 }
 0x1cf   : > { %p980_p2 = pnand %p989_p7, %p1685_p1 }
 0x1d1   : > { %1216 = dma.done.wait (!%p980_p2), %s636_s18, 1024  }
 0x1d2   : > { %1218 = vsyncadd (!%p980_p2), %s636_s18, 4294966272  ;;  %s645_s7 = scalar_lea.sflag [#allocation9], %s635_s30 }
 0x1d3   : > { %1220 = dma.done.wait (!%p980_p2), %s645_s7, 2048  }
 0x1d4   : > { %1222 = vsyncadd (!%p980_p2), %s645_s7, 4294965248  ;;  %s25_s22 = sadd.s32 1, %s1253_s22   ;;  %s1686_s18 = sld [smem:[#allocation15_spill]] }
 0x1d5   : > { %p22_p4 = scmp.ge.s32.totalorder %s25_s22, 6   ;;  %s1687_s20 = sld [smem:[#allocation17_spill]] }
 0x1d6   : > { %s1688_s11 = sld [smem:[#allocation18_spill]]  ;;  %s1689_s15 = smov %s1229_s16 }
 0x1d7   : > { %s1690_s16 = smov %s1233_s17  ;;  %s1691_s17 = smov %s1415_s1 }
 0x1d8   : > { %s1692_s19 = smov %s1249_s21  ;;  %24 = sbr.rel (!%p22_p4) target bundleno = 12 (0xc), region = 98 }
 0x1dc   : > { %s1693_s21 = smov %s1688_s11 }
 0x1df   :  { %650 = vsyncpa [#allocation3], 1 }
 0x1e0   :  { %652 = vsyncpa [#allocation3 + $0x1], 1 }
 0x1e1   :  { %653 = vsyncpa [#allocation6], 1 }
 0x1e2   :  { %654 = vsyncpa [#allocation4], 1 }
 0x1e3   :  { %656 = vsyncpa [#allocation4 + $0x1], 1 }
 0x1e4   :  { %657 = vsyncpa [#allocation9], 1 }
 0x1e5   :  { %659 = vsyncpa [#allocation9 + $0x1], 1 }

// kernel: tpu_custom_call.1
= control target key start
LH: loop header
LB: loop body
LE: loop exit
PB: predicated region body
PF: predicated region fallthrough
CT: control target
= control target key end

     0   :  { %s1645_s0 = inlined_call_operand.hbm [shape: f32[2,128,128], index: 0, kind: input, shape index: {}]   ;;  %s1646_s1 = inlined_call_operand.hbm [shape: f32[384,128], index: 1, kind: input, shape index: {}]   ;;  %s1647_s2 = inlined_call_operand.vmem [shape: f32[1,384], index: 2, kind: input, shape index: {}]   ;;  %s1648_s3 = inlined_call_operand.hbm [shape: f32[2,128,128], index: 3, kind: output, shape index: {0}]   ;;  %s1649_s4 = inlined_call_operand.hbm [shape: f32[2,128,256], index: 4, kind: output, shape index: {1}]  }
   0x1   :  { %1661 = sst [smem:[#allocation19_spill]] %s1646_s1 }
   0x2   :  { %10 = vsyncpa [#allocation3], 0 }
   0x3   :  { %12 = vsyncpa [#allocation3 + $0x1], 0 }
   0x4   :  { %13 = vsyncpa [#allocation6], 0 }
   0x5   :  { %14 = vsyncpa [#allocation4], 0 }
   0x6   :  { %16 = vsyncpa [#allocation4 + $0x1], 0 }
   0x7   :  { %17 = vsyncpa [#allocation9], 0 }
   0x8   :  { %19 = vsyncpa [#allocation9 + $0x1], 0  ;;  %s1290_s15 = smov 0   ;;  %s1292_s16 = smov 0  }
   0x9   :  { %s1294_s17 = smov 0   ;;  %s1296_s18 = smov 0  }
   0xa   :  { %s1298_s19 = smov 0   ;;  %s1300_s20 = smov 0  }
   0xb   :  { %s1302_s21 = smov 0   ;;  %s1304_s22 = smov 0  }
   0xc LB: > { %1662 = sst [smem:[#allocation14_spill]] %s1225_s15  ;;  %s755_s23 = sadd.s32 4294967295, %s1253_s22   ;;  %s1253_s22 = sphi %s1304_s22, %s25_s22   ;;  %s1249_s21 = sphi %s1302_s21, %s1693_s21   ;;  %s1245_s20 = sphi %s1300_s20, %s1687_s20   ;;  %s1241_s19 = sphi %s1298_s19, %s1692_s19   ;;  %s1237_s18 = sphi %s1296_s18, %s1686_s18   ;;  %s1233_s17 = sphi %s1294_s17, %s1691_s17   ;;  %s1229_s16 = sphi %s1292_s16, %s1690_s16   ;;  %s1225_s15 = sphi %s1290_s15, %s1689_s15  }
   0xd   : > { %1663 = sst [smem:[#allocation15_spill]] %s1245_s20  ;;  %s756_s24 = sadd.s32 4294967294, %s1253_s22  }
   0xe   : > { %p59_p0 = scmp.ne.s32.totalorder %s1229_s16, %s1225_s15  ;;  %p1334_p1 = scmp.eq.s32.totalorder %s755_s23, 0 }
   0xf   : > { %p1338_p2 = scmp.eq.s32.totalorder %s755_s23, 3  ;;  %p133_p3 = scmp.eq.s32.totalorder %s756_s24, 3 }
  0x10   : > { %s1664_s25 = scalar_select %p1334_p1, 1, 0 }
  0x11   : > { %s1665_s26 = scalar_select %p1338_p2, 1, 0 }
  0x12   : > { %p1344_p4 = por %p1334_p1, %p59_p0  ;;  %p757_p5 = scmp.ge.s32.totalorder %s1253_s22, 1 }
  0x13   : > { %p1349_p6 = por %p133_p3, %p59_p0  ;;  %p168_p7 = scmp.lt.s32.totalorder %s1253_s22, 5 }
  0x14   : > { %s1666_s27 = scalar_select %p1344_p4, 1, 0 }
  0x15   : > { %s1667_s28 = scalar_select %p1349_p6, 1, 0 }
  0x16   : > { %p1354_p8 = pnand %p757_p5, %p168_p7  ;;  %s1255_s30 = smov [#allocation5]  }
  0x17   : > { %1668 = sst [smem:[#allocation16_spill]] %s1667_s28  ;;  %s180_s5 = sshll.u32 %s1255_s30, 4  ;;  %s181_s5 = int_to_ptr.vmem [resolvable:$true] %s180_s5 }
  0x18   : > { %s1669_s29 = scalar_select %p1354_p8, 1, 0 }
  0x19   : > { %p971_p9 = pneg %p1354_p8  ;;  %s1671_s1 = sld [smem:[#allocation19_spill]] }
  0x1b   : > { %p1362_p10 = pnand %p971_p9, %p1334_p1 }
  0x1d   : > { %p1063_p12 = pneg %p1362_p10 }
  0x1f   : > { %s1061_s9 = scalar_lea.hbm %s1671_s1, 6144 }
  0x20   : > { %p1062_p11 = scmp.ne.s32.totalorder %s1671_s1, %s1061_s9  ;;  %p1068_p3 = scmp.lt.u32.totalorder %s1061_s9, %s1671_s1 }
  0x22   : > { %p1064_p13 = pnand %p1063_p12, %p1062_p11 }
  0x24   : > { %p1065_p0 = pneg %p1064_p13 }
  0x26   : > { %p1070_p5 = pnand %p1068_p3, %p1065_p0 }
  0x28   : > { %1073 = shalt.err (!%p1070_p5)
}
  0x29   : > { %s1074_s14 = scalar_lea.vmem %s181_s5, 6144  ;;  %p1082_p1 = scmp.lt.s32.totalorder %s181_s5, %s181_s5 }
  0x2a   : > { %p1075_p7 = scmp.ne.s32.totalorder %s181_s5, %s1074_s14  ;;  %p1083_p4 = scmp.lt.s32.totalorder %s1074_s14, %s1074_s14 }
  0x2c   : > { %p1077_p9 = pnand %p1075_p7, %p1063_p12  ;;  %p1084_p8 = por %p1083_p4, %p1082_p1 }
  0x2e   : > { %p1078_p6 = pneg %p1077_p9 }
  0x30   : > { %p1085_p2 = pnand %p1084_p8, %p1078_p6 }
  0x32   : > { %1088 = shalt.err (!%p1085_p2)
}
  0x33   : > { %s1654_s23 = smov 128   ;;  %s1655_s24 = smov 8  }
  0x34   : > { %974 = dma.hbm_to_vmem [thread:$0]  (!%p1362_p10), %s1671_s1, 6144, %s181_s5, [#allocation6], %s1654_s23, %s1654_s23, %s1655_s24  }
  0x35   : > { %s34_s8 = sadd.s32 1, %s1245_s20  ;;  %s37_s9 = sadd.s32 1, %s1249_s21 }
  0x36   : > { %p35_p1 = scmp.ge.s32.totalorder %s34_s8, 2  ;;  %s46_s10 = sadd.s32 1, %s1233_s17 }
  0x37   : > { %p53_p2 = scmp.ne.s32.totalorder %s1233_s17, %s1229_s16  ;;  %p54_p4 = scmp.eq.s32.totalorder %s1253_s22, 0 }
  0x38   : > { %s1695_s8 = smov (%p35_p1, %s34_s8), 0  ;;  %s1697_s9 = smov (!%p35_p1, %s37_s9), %s1249_s21 }
  0x39   : > { %1672 = sst [smem:[#allocation17_spill]] %s1695_s8  ;;  %s42_s6 = ssub.s32 %s1245_s20, %s1695_s8 }
  0x3a   : > { %p39_p6 = scmp.ge.s32.totalorder %s1697_s9, 2  ;;  %p1673_p8 = scmp.ne.s32.totalorder %s1665_s26, 0 }
  0x3b   : > { %p1402_p10 = por %p54_p4, %p53_p2  ;;  %p987_p12 = scmp.lt.s32.totalorder %s1253_s22, 4 }
  0x3c   : > { %p1398_p11 = por %p1673_p8, %p53_p2  ;;  %s1699_s9 = smov (%p39_p6, %s1697_s9), 0 }
  0x3d   : > { %1676 = sst [smem:[#allocation18_spill]] %s1699_s9  ;;  %s197_s12 = sand.u32 1, %s1233_s17  }
  0x3e   : > { %s761_s13 = sshll.u32 %s1245_s20, 3  ;;  %s41_s14 = ssub.s32 %s1249_s21, %s1699_s9 }
  0x3f   : > { %s43_s30 = sor.u32 %s42_s6, %s41_s14  ;;  %s760_s7 = sshll.u32 %s197_s12, 6 }
  0x40   : > { %p44_p13 = scmp.eq.s32.totalorder %s43_s30, 0  ;;  %s762_s26 = sshll.u32 %s1249_s21, 4 }
  0x41   : > { %s201_s23 = scalar_lea.vmem [#allocation2], %s760_s7  ;;  %s207_s8 = sadd.s32 %s762_s26, %s761_s13 }
  0x42   : > { %s210_s24 = sshll.u32 %s201_s23, 4  ;;  %s763_s28 = sshll.u32 %s207_s8, 7  ;;  %s1417_s24 = int_to_ptr.vmem [resolvable:$true] %s210_s24 }
  0x43   : > { %s1415_s1 = scalar_select %p44_p13, %s1233_s17, %s46_s10  }
  0x44   : > { %p1423_p0 = pnand %p987_p12, %p1402_p10  ;;  %s1430_s6 = scalar_lea.hbm %s1645_s0, %s763_s28 }
  0x45   : > { %s1432_s23 = scalar_lea.sflag [#allocation3], %s197_s12  ;;  %s1089_s8 = scalar_lea.hbm %s1430_s6, 1024 }
  0x46   : > { %p1090_p3 = scmp.ne.s32.totalorder %s1430_s6, %s1089_s8  ;;  %p1091_p5 = pneg %p1423_p0 }
  0x47   : > { %s1094_s9 = scalar_lea.hbm %s1645_s0, 4096  ;;  %p1095_p1 = scmp.lt.u32.totalorder %s1430_s6, %s1645_s0 }
  0x48   : > { %p1092_p7 = pnand %p1091_p5, %p1090_p3  ;;  %p1096_p2 = scmp.lt.u32.totalorder %s1094_s9, %s1089_s8 }
  0x49   : > { %p1098_p6 = scmp.lt.u32.totalorder %s1089_s8, %s1430_s6 }
  0x4a   : > { %p1093_p9 = pneg %p1092_p7  ;;  %p1097_p4 = por %p1096_p2, %p1095_p1 }
  0x4c   : > { %p1099_p8 = por %p1098_p6, %p1097_p4 }
  0x4e   : > { %p1100_p10 = pnand %p1099_p8, %p1093_p9 }
  0x50   : > { %1103 = shalt.err (!%p1100_p10)
}
  0x51   : > { %s1104_s12 = scalar_lea.vmem %s1417_s24, 1024  ;;  %s1258_s13 = smov [#allocation2]  }
  0x52   : > { %p1105_p12 = scmp.ne.s32.totalorder %s1417_s24, %s1104_s12  ;;  %s1109_s14 = sshll.u32 %s1258_s13, 4  ;;  %s1110_s14 = int_to_ptr.vmem [resolvable:$false] %s1109_s14 }
  0x53   : > { %s1111_s30 = scalar_lea.vmem %s1110_s14, 2048  ;;  %p1112_p7 = scmp.lt.s32.totalorder %s1417_s24, %s1110_s14 }
  0x54   : > { %p1107_p13 = pnand %p1105_p12, %p1091_p5  ;;  %p1113_p1 = scmp.lt.s32.totalorder %s1111_s30, %s1104_s12 }
  0x56   : > { %p1108_p3 = pneg %p1107_p13  ;;  %p1114_p2 = por %p1113_p1, %p1112_p7 }
  0x58   : > { %p1115_p4 = pnand %p1114_p2, %p1108_p3 }
  0x5a   : > { %1118 = shalt.err (!%p1115_p4)
}
  0x5b   : > { %s1678_s7 = smov 8   ;;  %s1679_s26 = smov 128  }
  0x5c   : > { %978 = dma.hbm_to_vmem [thread:$0]  (!%p1423_p0), %s1430_s6, 1024, %s1417_s24, %s1432_s23, %s1679_s26, %s1679_s26, %s1678_s7  }
  0x5d   : > { %p1680_p5 = scmp.ne.s32.totalorder %s1669_s29, 0 }
  0x5e   : > { %s1466_s8 = sand.u32 (!%p1680_p5), 1, %s1229_s16   ;;  %p1681_p9 = scmp.ne.s32.totalorder (!%p1680_p5), %s1666_s27, 0 }
  0x5f   : > { %222 = sbr.rel (%p1680_p5) target bundleno = 455 (0x1c7), region = 32  ;;  %s765_s10 = sshll.u32 (!%p1680_p5), %s1466_s8, 6 }
  0x60   : > { %s225_s20 = scalar_lea.sflag (!%p1680_p5), [#allocation3], %s1466_s8  ;;  %s1472_s15 = scalar_lea.vmem (!%p1680_p5), [#allocation2], %s765_s10 }
  0x66   : > { %1208 = dma.done.wait (%p1681_p9), %s225_s20, 1024  }
  0x67   : > { %1210 = vsyncadd (%p1681_p9), %s225_s20, 4294966272  ;;  %p1682_p0 = scmp.ne.s32.totalorder %s1664_s25, 0 }
  0x69   : > { %1212 = dma.done.wait (%p1682_p0), [#allocation6], 6144  }
  0x6a   : > { %1214 = vsyncadd (%p1682_p0), [#allocation6], 4294961152  ;;  %v289_v0 = vld [vmem:[#allocation5 + $0x80] sm:$0xff]  ;;  %v290_v1 = vld [vmem:[#allocation5 + $0x88] sm:$0xff]  ;;  %s768_s29 = sshll.u32 %s1466_s8, 7  ;;  %s1507_s24 = scalar_lea.vmem [#allocation7], %s765_s10 }
  0x6b   : > { %v273_v2 = vld [vmem:[#allocation5] sm:$0xff]  ;;  %v897_v3 = vpack.c.bf16 %v290_v1, %v289_v0  ;;  %v274_v4 = vld [vmem:[#allocation5 + $0x8] sm:$0xff]  ;;  %v291_v5 = vld [vmem:[#allocation5 + $0x90] sm:$0xff]  ;;  %s1510_s6 = scalar_lea.vmem [#allocation8], %s768_s29  ;;  %s771_s23 = sshll.u32 %s1237_s18, 3 }
  0x6c   : > { %v292_v6 = vld [vmem:[#allocation5 + $0x98] sm:$0xff]  ;;  %v899_v7 = vpack.c.bf16 %v274_v4, %v273_v2  ;;  %v305_v9 = vld [vmem:[#allocation5 + $0x100] sm:$0xff]  ;;  %v306_v10 = vld [vmem:[#allocation5 + $0x108] sm:$0xff]  ;;  %s772_s9 = sshll.u32 %s1241_s19, 4  ;;  %s780_s28 = sshll.u32 %s1237_s18, 4 }
  0x6d   : > { %v901_v8 = vpack.c.bf16 %v292_v6, %v291_v5  ;;  %898 = vmatprep.subr.bf16.mxu0 %v897_v3  ;;  %v929_v11 = vpack.c.bf16 %v306_v10, %v305_v9  ;;  %v307_v12 = vld [vmem:[#allocation5 + $0x110] sm:$0xff]  ;;  %v276_v14 = vld [vmem:[#allocation5 + $0x18] sm:$0xff]  ;;  %v293_v16 = vld [vmem:[#allocation5 + $0xa0] sm:$0xff]  ;;  %s776_s5 = sshll.u32 %s1241_s19, 5  ;;  %s598_s12 = sadd.s32 %s772_s9, %s771_s23 }
  0x6e   : > { %900 = vmatpush3.bf16.xpose.msra.mxu0 %v899_v7  ;;  %v275_v13 = vld [vmem:[#allocation5 + $0x10] sm:$0xff]  ;;  %v308_v15 = vld [vmem:[#allocation5 + $0x118] sm:$0xff]  ;;  %v294_v17 = vld [vmem:[#allocation5 + $0xa8] sm:$0xff]  ;;  %s601_s13 = sshll.u32 %s1507_s24, 4  ;;  %s617_s14 = sadd.s32 %s780_s28, %s776_s5  ;;  %s1546_s13 = int_to_ptr.vmem [resolvable:$true] %s601_s13 }
  0x6f   : > { %902 = vmatprep.subr.bf16.mxu0 %v901_v8  ;;  %930 = vmatprep.subr.bf16.mxu1 %v929_v11  ;;  %v933_v18 = vpack.c.bf16 %v308_v15, %v307_v12  ;;  %v903_v19 = vpack.c.bf16 %v276_v14, %v275_v13  ;;  %v905_v20 = vpack.c.bf16 %v294_v17, %v293_v16  ;;  %v309_v21 = vld [vmem:[#allocation5 + $0x120] sm:$0xff]  ;;  %v310_v22 = vld [vmem:[#allocation5 + $0x128] sm:$0xff]  ;;  %v295_v26 = vld [vmem:[#allocation5 + $0xb0] sm:$0xff]  ;;  %v323_v16 = vlaneseq  ;;  %s773_s30 = sshll.u32 %s598_s12, 7  ;;  %s777_s18 = sshll.u32 %s617_s14, 7 }
  0x70   : > { %932 = vmatpush3.bf16.xpose.msra.mxu1 %v929_v11  ;;  %v937_v23 = vpack.c.bf16 %v310_v22, %v309_v21  ;;  %v277_v24 = vld [vmem:[#allocation5 + $0x20] sm:$0xff]  ;;  %v278_v25 = vld [vmem:[#allocation5 + $0x28] sm:$0xff]  ;;  %v296_v27 = vld [vmem:[#allocation5 + $0xb8] sm:$0xff]  ;;  %s620_s19 = sshll.u32 %s1510_s6, 4  ;;  %s1555_s10 = scalar_lea.hbm %s1648_s3, %s773_s30  ;;  %s1564_s19 = int_to_ptr.vmem [resolvable:$true] %s620_s19 }
  0x71   : > { %934 = vmatprep.subr.bf16.mxu1 %v933_v18  ;;  %v1483_v28 = vld [vmem:[%s1472_s15] sm:$0xff]  ;;  %v907_v29 = vpack.c.bf16 %v278_v25, %v277_v24  ;;  %v909_v30 = vpack.c.bf16 %v296_v27, %v295_v26  ;;  %v311_v31 = vld [vmem:[#allocation5 + $0x130] sm:$0xff]  ;;  %v312_v32 = vld [vmem:[#allocation5 + $0x138] sm:$0xff]  ;;  %v324_v17 = vshrl.u32 %v323_v16, 7  ;;  %s1562_s25 = scalar_lea.hbm %s1649_s4, %s777_s18  ;;  %s581_s27 = scalar_lea.sflag [#allocation4], %s1466_s8 }
  0x72   : > { %813 = vmatprep.mubr.f32.mxu0 %v1483_v28  ;;  %885 = vmatprep.mubr.f32.mxu1 %v1483_v28  ;;  %v941_v33 = vpack.c.bf16 %v312_v32, %v311_v31  ;;  %v279_v34 = vld [vmem:[#allocation5 + $0x30] sm:$0xff]  ;;  %v280_v35 = vld [vmem:[#allocation5 + $0x38] sm:$0xff]  ;;  %v297_v36 = vld [vmem:[#allocation5 + $0xc0] sm:$0xff]  ;;  %s1119_s29 = scalar_lea.vmem %s1546_s13, 1024  ;;  %s1259_s23 = smov [#allocation7]  }
  0x73   : > { %v298_v37 = vld [vmem:[#allocation5 + $0xc8] sm:$0xff]  ;;  %v911_v38 = vpack.c.bf16 %v280_v35, %v279_v34  ;;  %v313_v40 = vld [vmem:[#allocation5 + $0x140] sm:$0xff]  ;;  %v299_v45 = vld [vmem:[#allocation5 + $0xd0] sm:$0xff]  ;;  %v333_v21 = vsub.s32 2, %v324_v17  ;;  %p1120_p6 = scmp.ne.s32.totalorder %s1546_s13, %s1119_s29  ;;  %s1123_s9 = sshll.u32 %s1259_s23, 4  ;;  %s1124_s9 = int_to_ptr.vmem [resolvable:$false] %s1123_s9 }
  0x74   : > { %v913_v39 = vpack.c.bf16 %v298_v37, %v297_v36  ;;  %v314_v41 = vld [vmem:[#allocation5 + $0x148] sm:$0xff]  ;;  %v281_v43 = vld [vmem:[#allocation5 + $0x40] sm:$0xff]  ;;  %v300_v46 = vld [vmem:[#allocation5 + $0xd8] sm:$0xff]  ;;  %s1125_s28 = scalar_lea.vmem %s1124_s9, 2048  ;;  %p1126_p12 = scmp.lt.s32.totalorder %s1546_s13, %s1124_s9 }
  0x75   : > { %v945_v42 = vpack.c.bf16 %v314_v41, %v313_v40  ;;  %v282_v44 = vld [vmem:[#allocation5 + $0x48] sm:$0xff]  ;;  %v917_v48 = vpack.c.bf16 %v300_v46, %v299_v45  ;;  %v315_v49 = vld [vmem:[#allocation5 + $0x150] sm:$0xff]  ;;  %v316_v50 = vld [vmem:[#allocation5 + $0x158] sm:$0xff]  ;;  %p1121_p8 = pnand %p1120_p6, %p1398_p11  ;;  %p1127_p13 = scmp.lt.s32.totalorder %s1125_s28, %s1119_s29 }
  0x76   : > { %904 = vmatpush3.bf16.xpose.msra.mxu0 %v903_v19  ;;  %v915_v47 = vpack.c.bf16 %v282_v44, %v281_v43  ;;  %v949_v51 = vpack.c.bf16 %v316_v50, %v315_v49  ;;  %v283_v52 = vld [vmem:[#allocation5 + $0x50] sm:$0xff]  ;;  %v284_v53 = vld [vmem:[#allocation5 + $0x58] sm:$0xff]  ;;  %v301_v54 = vld [vmem:[#allocation5 + $0xe0] sm:$0xff] }
  0x77   : > { %906 = vmatprep.subr.bf16.mxu0 %v905_v20  ;;  %v302_v55 = vld [vmem:[#allocation5 + $0xe8] sm:$0xff]  ;;  %v919_v56 = vpack.c.bf16 %v284_v53, %v283_v52  ;;  %v317_v58 = vld [vmem:[#allocation5 + $0x160] sm:$0xff]  ;;  %v303_v63 = vld [vmem:[#allocation5 + $0xf0] sm:$0xff]  ;;  %v329_v20 = vsub.s32 1, %v324_v17  ;;  %p1122_p10 = pneg %p1121_p8  ;;  %p1128_p3 = por %p1127_p13, %p1126_p12 }
  0x78   : > { %936 = vmatpush3.bf16.xpose.msra.mxu1 %v933_v18  ;;  %v921_v57 = vpack.c.bf16 %v302_v55, %v301_v54  ;;  %v318_v59 = vld [vmem:[#allocation5 + $0x168] sm:$0xff]  ;;  %v285_v61 = vld [vmem:[#allocation5 + $0x60] sm:$0xff]  ;;  %v304_v0 = vld [vmem:[#allocation5 + $0xf8] sm:$0xff]  ;;  %v325_v18 = vsub.s32 0, %v324_v17 }
  0x79   : > { %938 = vmatprep.subr.bf16.mxu1 %v937_v23  ;;  %v953_v60 = vpack.c.bf16 %v318_v59, %v317_v58  ;;  %v286_v62 = vld [vmem:[#allocation5 + $0x68] sm:$0xff]  ;;  %v925_v2 = vpack.c.bf16 %v304_v0, %v303_v63  ;;  %v319_v3 = vld [vmem:[#allocation5 + $0x170] sm:$0xff]  ;;  %v320_v4 = vld [vmem:[#allocation5 + $0x178] sm:$0xff]  ;;  %p1129_p7 = pnand %p1128_p3, %p1122_p10 }
  0x7a   : > { %v923_v1 = vpack.c.bf16 %v286_v62, %v285_v61  ;;  %v957_v5 = vpack.c.bf16 %v320_v4, %v319_v3  ;;  %v287_v6 = vld [vmem:[#allocation5 + $0x70] sm:$0xff]  ;;  %v288_v7 = vld [vmem:[#allocation5 + $0x78] sm:$0xff]  ;;  %v266_v9 = vld [vmem:[%s1472_s15 + $0x8] sm:$0xff] }
  0x7b   : > { %v927_v8 = vpack.c.bf16 %v288_v7, %v287_v6  ;;  %v267_v10 = vld [vmem:[%s1472_s15 + $0x10] sm:$0xff]  ;;  %v268_v11 = vld [vmem:[%s1472_s15 + $0x18] sm:$0xff]  ;;  %v269_v12 = vld [vmem:[%s1472_s15 + $0x20] sm:$0xff] }
  0x7c   : > { %v270_v13 = vld [vmem:[%s1472_s15 + $0x28] sm:$0xff]  ;;  %v271_v14 = vld [vmem:[%s1472_s15 + $0x30] sm:$0xff]  ;;  %v272_v15 = vld [vmem:[%s1472_s15 + $0x38] sm:$0xff] }
  0x7d   : > { %v321_v19 = vld [vmem:[%s1647_s2] sm:$0x7] }
  0x7e   : > { %908 = vmatpush3.bf16.xpose.msra.mxu0 %v907_v29  ;;  %v1498_v22 = vrot.slane %v321_v19, %v325_v18  ;;  %v334_v25 = vrot.slane %v321_v19, %v333_v21 }
  0x7f   : > { %910 = vmatprep.subr.bf16.mxu0 %v909_v30 }
  0x80   : > { %940 = vmatpush3.bf16.xpose.msra.mxu1 %v937_v23  ;;  %v1501_v23 = vrot.slane %v321_v19, %v329_v20 }
  0x81   : > { %942 = vmatprep.subr.bf16.mxu1 %v941_v33 }
  0x86   : > { %912 = vmatpush3.bf16.xpose.msra.mxu0 %v911_v38 }
  0x87   : > { %914 = vmatprep.subr.bf16.mxu0 %v913_v39 }
  0x88   : > { %944 = vmatpush3.bf16.xpose.msra.mxu1 %v941_v33 }
  0x89   : > { %946 = vmatprep.subr.bf16.mxu1 %v945_v42 }
  0x8e   : > { %916 = vmatpush3.bf16.xpose.msra.mxu0 %v915_v47 }
  0x8f   : > { %918 = vmatprep.subr.bf16.mxu0 %v917_v48 }
  0x90   : > { %948 = vmatpush3.bf16.xpose.msra.mxu1 %v945_v42 }
  0x91   : > { %950 = vmatprep.subr.bf16.mxu1 %v949_v51 }
  0x96   : > { %920 = vmatpush3.bf16.xpose.msra.mxu0 %v919_v56 }
  0x97   : > { %922 = vmatprep.subr.bf16.mxu0 %v921_v57 }
  0x98   : > { %952 = vmatpush3.bf16.xpose.msra.mxu1 %v949_v51 }
  0x99   : > { %954 = vmatprep.subr.bf16.mxu1 %v953_v60 }
  0x9e   : > { %924 = vmatpush3.bf16.xpose.msra.mxu0 %v923_v1 }
  0x9f   : > { %926 = vmatprep.subr.bf16.mxu0 %v925_v2 }
  0xa0   : > { %956 = vmatpush3.bf16.xpose.msra.mxu1 %v953_v60 }
  0xa1   : > { %958 = vmatprep.subr.bf16.mxu1 %v957_v5 }
  0xa6   : > { %928 = vmatpush3.bf16.xpose.msra.mxu0 %v927_v8 }
  0xa8   : > { %960 = vmatpush3.bf16.xpose.msra.mxu1 %v957_v5 }
  0xad   : > { %814 = vmatmul.mubr.f32.vlgmr.msra.gmra.mrb[0].mxu0 %v1483_v28 }
  0xae   : > { %815 = vmatprep.mubr.f32.mxu0 %v266_v9 }
  0xaf   : > { %886 = vmatmul.mubr.f32.vlgmr.msra.gmra.mrb[0].mxu1 %v266_v9 }
  0xb0   : > { %888 = vmatprep.mubr.f32.mxu1 %v267_v10 }
  0xb1   : > { %816 = vmatmul.mubr.f32.gmra.mrb[2].mxu0 %v266_v9 }
  0xb2   : > { %817 = vmatprep.mubr.f32.mxu0 %v267_v10 }
  0xb3   : > { %889 = vmatmul.mubr.f32.gmra.mrb[2].mxu1 %v268_v11 }
  0xb4   : > { %891 = vmatprep.mubr.f32.mxu1 %v269_v12 }
  0xb5   : > { %818 = vmatmul.mubr.f32.gmra.mrb[4].mxu0 %v267_v10 }
  0xb6   : > { %819 = vmatprep.mubr.f32.mxu0 %v268_v11 }
  0xb7   : > { %892 = vmatmul.mubr.f32.gmra.mrb[4].mxu1 %v270_v13 }
  0xb8   : > { %894 = vmatprep.mubr.f32.mxu1 %v271_v14 }
  0xb9   : > { %820 = vmatmul.mubr.f32.gmra.mrb[6].mxu0 %v268_v11 }
  0xba   : > { %821 = vmatprep.mubr.f32.mxu0 %v269_v12 }
  0xbb   : > { %895 = vmatmul.mubr.f32.gmra.mrb[6].mxu1 %v272_v15 }
  0xbd   : > { %822 = vmatmul.mubr.f32.gmra.mrb[8].mxu0 %v269_v12 }
  0xbe   : > { %823 = vmatprep.mubr.f32.mxu0 %v270_v13 }
  0xc1   : > { %824 = vmatmul.mubr.f32.gmra.mrb[10].mxu0 %v270_v13 }
  0xc2   : > { %825 = vmatprep.mubr.f32.mxu0 %v271_v14 }
  0xc5   : > { %826 = vmatmul.mubr.f32.gmra.mrb[12].mxu0 %v271_v14 }
  0xc6   : > { %827 = vmatprep.mubr.f32.mxu0 %v272_v15 }
  0xc9   : > { %828 = vmatmul.mubr.f32.gmra.mrb[14].mxu0 %v272_v15 }
 0x180   : > { %v404_v24 = vpop.f32.mrb[0].mxu0 }
 0x181   : > { %v405_v26 = vadd.f32 %v404_v24, %v1498_v22  ;;  %v406_v27 = vpop.f32.mrb[1].mxu0 }
 0x182   : > { %v407_v28 = vadd.f32 %v406_v27, %v1501_v23  ;;  %v887_v29 = vpop.f32.mrb[0].mxu1 }
 0x183   : > { %556 = vst [vmem:[%s1507_s24] sm:$0xff] %v405_v26  ;;  %v523_v31 = vadd.f32 %v887_v29, %v334_v25  ;;  %v517_v32 = vpop.f32.mrb[1].mxu1 }
 0x184   : > { %564 = vst [vmem:[%s1510_s6] sm:$0xff] %v407_v28  ;;  %v410_v30 = vpop.f32.mrb[2].mxu0  ;;  %v518_v35 = vadd.f32 %v517_v32, %v334_v25 }
 0x185   : > { %v411_v33 = vadd.f32 %v410_v30, %v1498_v22  ;;  %v412_v34 = vpop.f32.mrb[3].mxu0  ;;  %567 = vst [vmem:[%s1510_s6 + $0x18] sm:$0xff] %v523_v31 }
 0x186   : > { %v413_v36 = vadd.f32 %v412_v34, %v1501_v23  ;;  %565 = vst [vmem:[%s1510_s6 + $0x8] sm:$0xff] %v518_v35  ;;  %v890_v37 = vpop.f32.mrb[2].mxu1 }
 0x187   : > { %557 = vst [vmem:[%s1507_s24 + $0x8] sm:$0xff] %v411_v33  ;;  %v533_v39 = vadd.f32 %v890_v37, %v334_v25  ;;  %v527_v40 = vpop.f32.mrb[3].mxu1 }
 0x188   : > { %566 = vst [vmem:[%s1510_s6 + $0x10] sm:$0xff] %v413_v36  ;;  %v416_v38 = vpop.f32.mrb[4].mxu0  ;;  %v528_v43 = vadd.f32 %v527_v40, %v334_v25 }
 0x189   : > { %v417_v41 = vadd.f32 %v416_v38, %v1498_v22  ;;  %v418_v42 = vpop.f32.mrb[5].mxu0  ;;  %571 = vst [vmem:[%s1510_s6 + $0x38] sm:$0xff] %v533_v39 }
 0x18a   : > { %v419_v44 = vadd.f32 %v418_v42, %v1501_v23  ;;  %569 = vst [vmem:[%s1510_s6 + $0x28] sm:$0xff] %v528_v43  ;;  %v893_v45 = vpop.f32.mrb[4].mxu1 }
 0x18b   : > { %558 = vst [vmem:[%s1507_s24 + $0x10] sm:$0xff] %v417_v41  ;;  %v543_v47 = vadd.f32 %v893_v45, %v334_v25  ;;  %v537_v48 = vpop.f32.mrb[5].mxu1 }
 0x18c   : > { %568 = vst [vmem:[%s1510_s6 + $0x20] sm:$0xff] %v419_v44  ;;  %v422_v46 = vpop.f32.mrb[6].mxu0  ;;  %v538_v51 = vadd.f32 %v537_v48, %v334_v25 }
 0x18d   : > { %v423_v49 = vadd.f32 %v422_v46, %v1498_v22  ;;  %v424_v50 = vpop.f32.mrb[7].mxu0  ;;  %575 = vst [vmem:[%s1510_s6 + $0x58] sm:$0xff] %v543_v47 }
 0x18e   : > { %v425_v52 = vadd.f32 %v424_v50, %v1501_v23  ;;  %573 = vst [vmem:[%s1510_s6 + $0x48] sm:$0xff] %v538_v51  ;;  %v896_v53 = vpop.f32.mrb[6].mxu1 }
 0x18f   : > { %559 = vst [vmem:[%s1507_s24 + $0x18] sm:$0xff] %v423_v49  ;;  %v553_v55 = vadd.f32 %v896_v53, %v334_v25  ;;  %v547_v56 = vpop.f32.mrb[7].mxu1 }
 0x190   : > { %570 = vst [vmem:[%s1510_s6 + $0x30] sm:$0xff] %v425_v52  ;;  %v428_v54 = vpop.f32.mrb[8].mxu0  ;;  %v548_v59 = vadd.f32 %v547_v56, %v334_v25 }
 0x191   : > { %v429_v57 = vadd.f32 %v428_v54, %v1498_v22  ;;  %v430_v58 = vpop.f32.mrb[9].mxu0  ;;  %579 = vst [vmem:[%s1510_s6 + $0x78] sm:$0xff] %v553_v55 }
 0x192   : > { %v431_v60 = vadd.f32 %v430_v58, %v1501_v23  ;;  %577 = vst [vmem:[%s1510_s6 + $0x68] sm:$0xff] %v548_v59 }
 0x193   : > { %560 = vst [vmem:[%s1507_s24 + $0x20] sm:$0xff] %v429_v57 }
 0x194   : > { %572 = vst [vmem:[%s1510_s6 + $0x40] sm:$0xff] %v431_v60  ;;  %v434_v61 = vpop.f32.mrb[10].mxu0 }
 0x195   : > { %v435_v62 = vadd.f32 %v434_v61, %v1498_v22  ;;  %v436_v63 = vpop.f32.mrb[11].mxu0 }
 0x196   : > { %v437_v0 = vadd.f32 %v436_v63, %v1501_v23 }
 0x197   : > { %561 = vst [vmem:[%s1507_s24 + $0x28] sm:$0xff] %v435_v62 }
 0x198   : > { %574 = vst [vmem:[%s1510_s6 + $0x50] sm:$0xff] %v437_v0  ;;  %v440_v1 = vpop.f32.mrb[12].mxu0 }
 0x199   : > { %v441_v2 = vadd.f32 %v440_v1, %v1498_v22  ;;  %v442_v3 = vpop.f32.mrb[13].mxu0 }
 0x19a   : > { %v443_v4 = vadd.f32 %v442_v3, %v1501_v23 }
 0x19b   : > { %562 = vst [vmem:[%s1507_s24 + $0x30] sm:$0xff] %v441_v2 }
 0x19c   : > { %576 = vst [vmem:[%s1510_s6 + $0x60] sm:$0xff] %v443_v4  ;;  %v446_v5 = vpop.f32.mrb[14].mxu0 }
 0x19d   : > { %v447_v6 = vadd.f32 %v446_v5, %v1498_v22  ;;  %v448_v7 = vpop.f32.mrb[15].mxu0 }
 0x19e   : > { %v449_v8 = vadd.f32 %v448_v7, %v1501_v23 }
 0x19f   : > { %563 = vst [vmem:[%s1507_s24 + $0x38] sm:$0xff] %v447_v6 }
 0x1a0   : > { %578 = vst [vmem:[%s1510_s6 + $0x70] sm:$0xff] %v449_v8 }
 0x1a1   : > { %1132 = shalt.err (!%p1129_p7)
}
 0x1a2   : > { %s1133_s24 = scalar_lea.hbm %s1555_s10, 1024  ;;  %s1137_s12 = scalar_lea.hbm %s1648_s3, 4096 }
 0x1a3   : > { %p1134_p1 = scmp.ne.s32.totalorder %s1555_s10, %s1133_s24  ;;  %p1138_p5 = scmp.lt.u32.totalorder %s1555_s10, %s1648_s3 }
 0x1a4   : > { %p1139_p9 = scmp.lt.u32.totalorder %s1137_s12, %s1133_s24  ;;  %p1141_p6 = scmp.lt.u32.totalorder %s1133_s24, %s1555_s10 }
 0x1a5   : > { %p1135_p2 = pnand %p1134_p1, %p1398_p11 }
 0x1a6   : > { %p1140_p0 = por %p1139_p9, %p1138_p5 }
 0x1a7   : > { %p1136_p4 = pneg %p1135_p2 }
 0x1a8   : > { %p1142_p8 = por %p1141_p6, %p1140_p0 }
 0x1aa   : > { %p1143_p10 = pnand %p1142_p8, %p1136_p4 }
 0x1ac   : > { %1146 = shalt.err (!%p1143_p10)
}
 0x1ad   : > { %s1260_s18 = smov 128   ;;  %s1261_s7 = smov 8  }
 0x1ae   : > { %967 = dma.vmem_to_hbm [thread:$0]  (%p1398_p11), %s1546_s13, 1024, %s1555_s10, %s581_s27, %s1260_s18, %s1260_s18, %s1261_s7  }
 0x1af   : > { %s586_s26 = scalar_lea.sflag [#allocation9], %s1466_s8  ;;  %s1147_s20 = scalar_lea.vmem %s1564_s19, 2048 }
 0x1b0   : > { %p1148_p12 = scmp.ne.s32.totalorder %s1564_s19, %s1147_s20  ;;  %s1262_s15 = smov [#allocation8]  }
 0x1b1   : > { %s1151_s29 = sshll.u32 %s1262_s15, 4  ;;  %s1152_s29 = int_to_ptr.vmem [resolvable:$false] %s1151_s29 }
 0x1b2   : > { %p1149_p13 = pnand %p1148_p12, %p1398_p11  ;;  %s1153_s23 = scalar_lea.vmem %s1152_s29, 4096 }
 0x1b3   : > { %p1154_p7 = scmp.lt.s32.totalorder %s1564_s19, %s1152_s29  ;;  %p1155_p1 = scmp.lt.s32.totalorder %s1153_s23, %s1147_s20 }
 0x1b4   : > { %p1150_p3 = pneg %p1149_p13 }
 0x1b5   : > { %p1156_p2 = por %p1155_p1, %p1154_p7 }
 0x1b7   : > { %p1157_p4 = pnand %p1156_p2, %p1150_p3 }
 0x1b9   : > { %1160 = shalt.err (!%p1157_p4)
}
 0x1ba   : > { %s1161_s13 = scalar_lea.hbm %s1562_s25, 2048  ;;  %s1165_s9 = scalar_lea.hbm %s1649_s4, 8192 }
 0x1bb   : > { %p1162_p5 = scmp.ne.s32.totalorder %s1562_s25, %s1161_s13  ;;  %p1166_p6 = scmp.lt.u32.totalorder %s1562_s25, %s1649_s4 }
 0x1bc   : > { %p1167_p8 = scmp.lt.u32.totalorder %s1165_s9, %s1161_s13  ;;  %p1169_p12 = scmp.lt.u32.totalorder %s1161_s13, %s1562_s25 }
 0x1bd   : > { %p1163_p9 = pnand %p1162_p5, %p1398_p11 }
 0x1be   : > { %p1168_p10 = por %p1167_p8, %p1166_p6 }
 0x1bf   : > { %p1164_p0 = pneg %p1163_p9 }
 0x1c0   : > { %p1170_p13 = por %p1169_p12, %p1168_p10 }
 0x1c2   : > { %p1171_p3 = pnand %p1170_p13, %p1164_p0 }
 0x1c4   : > { %1174 = shalt.err (!%p1171_p3)
}
 0x1c5   : > { %s1263_s6 = smov 256   ;;  %s1264_s5 = smov 16  }
 0x1c6   : > { %968 = dma.vmem_to_hbm [thread:$0]  (%p1398_p11), %s1564_s19, 2048, %s1562_s25, %s586_s26, %s1263_s6, %s1263_s6, %s1264_s5  }
 0x1c7 PF: > { %s1683_s12 = sld [smem:[#allocation14_spill]]  ;;  %s1684_s14 = sld [smem:[#allocation16_spill]] }
 0x1c8   : > { %p989_p7 = scmp.ge.s32.totalorder %s1253_s22, 2 }
 0x1cd   : > { %s635_s30 = sand.u32 1, %s1683_s12   ;;  %p1685_p1 = scmp.ne.s32.totalorder %s1684_s14, 0 }
 0x1ce   : > { %s636_s18 = scalar_lea.sflag [#allocation4], %s635_s30 }
 0x1cf   : > { %p980_p2 = pnand %p989_p7, %p1685_p1 }
 0x1d1   : > { %1216 = dma.done.wait (!%p980_p2), %s636_s18, 1024  }
 0x1d2   : > { %1218 = vsyncadd (!%p980_p2), %s636_s18, 4294966272  ;;  %s645_s7 = scalar_lea.sflag [#allocation9], %s635_s30 }
 0x1d3   : > { %1220 = dma.done.wait (!%p980_p2), %s645_s7, 2048  }
 0x1d4   : > { %1222 = vsyncadd (!%p980_p2), %s645_s7, 4294965248  ;;  %s25_s22 = sadd.s32 1, %s1253_s22   ;;  %s1686_s18 = sld [smem:[#allocation15_spill]] }
 0x1d5   : > { %p22_p4 = scmp.ge.s32.totalorder %s25_s22, 6   ;;  %s1687_s20 = sld [smem:[#allocation17_spill]] }
 0x1d6   : > { %s1688_s11 = sld [smem:[#allocation18_spill]]  ;;  %s1689_s15 = smov %s1229_s16 }
 0x1d7   : > { %s1690_s16 = smov %s1233_s17  ;;  %s1691_s17 = smov %s1415_s1 }
 0x1d8   : > { %s1692_s19 = smov %s1249_s21  ;;  %24 = sbr.rel (!%p22_p4) target bundleno = 12 (0xc), region = 98 }
 0x1dc   : > { %s1693_s21 = smov %s1688_s11 }
 0x1df   :  { %650 = vsyncpa [#allocation3], 1 }
 0x1e0   :  { %652 = vsyncpa [#allocation3 + $0x1], 1 }
 0x1e1   :  { %653 = vsyncpa [#allocation6], 1 }
 0x1e2   :  { %654 = vsyncpa [#allocation4], 1 }
 0x1e3   :  { %656 = vsyncpa [#allocation4 + $0x1], 1 }
 0x1e4   :  { %657 = vsyncpa [#allocation9], 1 }
 0x1e5   :  { %659 = vsyncpa [#allocation9 + $0x1], 1 }

</bundles_post_ra>
